<compile_context>
chip_gen: v7x
topology: tpu7x:2x2x1
jax: 0.10.0
libtpu: 0.0.40
codegen_flags: <defaults>
</compile_context>

<pallas_src>
import math
import jax
import jax.numpy as jnp
from jax.experimental import pallas as pl
from jax.experimental.pallas import tpu as pltpu

LN_EPS = 1e-5


def _make_kernel(n_agents, n_head, channels):
    N, C = n_agents, channels
    NC = N * C

    def kernel(q_ref, kp_ref, vp_ref, wq_ref, wk_ref, wv_ref, woff_ref,
               bbig_ref, bsmall_ref, mcen_ref, asum_ref, mt_ref, out_ref):
        q = q_ref[...]                                    # (TL, C) f32
        q_bf = q.astype(jnp.bfloat16)

        b_big = bbig_ref[...]                             # (3, NC) f32 (scale folded into bq)
        bq, bk, bv = b_big[0:1, :], b_big[1:2, :], b_big[2:3, :]

        bs = bsmall_ref[...]                              # (8, C) f32
        bo, b1, b2 = bs[0:1, :], bs[1:2, :], bs[2:3, :]
        g1, be1 = bs[3:4, :], bs[4:5, :]
        g2, be2 = bs[5:6, :], bs[6:7, :]

        woff = woff_ref[...]                              # (NC + 2C, C) bf16
        wo_pack = woff[0:NC, :]                           # wo tiled over agents (agent-sum folded)
        w1 = woff[NC:NC + C, :]
        w2 = woff[NC + C:NC + 2 * C, :]

        # --- projections on agent-packed slabs (bf16 MXU, f32 accumulate) ---
        Qt = jnp.dot(q_bf, wq_ref[...], preferred_element_type=jnp.float32) + bq       # (TL, NC)
        K = jnp.dot(kp_ref[...], wk_ref[...], preferred_element_type=jnp.float32) + bk  # (TL, NC)
        V = (jnp.dot(vp_ref[...], wv_ref[...], preferred_element_type=jnp.float32)
             + bv).astype(jnp.bfloat16)                   # keep V bf16 -> halves its vreg footprint

        # --- per-(agent, head) scores; softmax mean-shift folded into mcen ---
        qk = (Qt * K).astype(jnp.bfloat16)                # Qt/K die here (single-pass bf16 vmatmul next)
        s_c = jnp.dot(qk, mcen_ref[...], preferred_element_type=jnp.float32)           # (TL, N*nH)

        # --- softmax over agents, per head: no slices / concat / rolls ---
        e = jnp.exp(s_c)                                                                # EUP, f32
        denom = jnp.dot(e.astype(jnp.bfloat16), asum_ref[...],
                        preferred_element_type=jnp.float32)        # per-head agent sums (broadcast)
        p = e * pl.reciprocal(denom, approx=True)                                       # EUP slot

        # --- expand probs to channels; out-proj folded with the agent-sum ---
        p_exp = jnp.dot(p.astype(jnp.bfloat16), mt_ref[...],
                        preferred_element_type=jnp.float32)                             # (TL, NC)
        ctx = p_exp.astype(jnp.bfloat16) * V                                            # (TL, NC) bf16
        attn = jnp.dot(ctx, wo_pack, preferred_element_type=jnp.float32) + bo           # (TL, C)

        # --- dropout1 is identity (p=0); residual + norm1 (f32) ---
        x = q + attn
        mu = jnp.mean(x, axis=-1, keepdims=True)
        var = jnp.mean((x - mu) ** 2, axis=-1, keepdims=True)
        x1 = (x - mu) * jax.lax.rsqrt(var + LN_EPS) * g1 + be1

        # --- feed-forward: linear2(relu(linear1(x1))) ---
        h = jnp.dot(x1.astype(jnp.bfloat16), w1, preferred_element_type=jnp.float32) + b1
        h = jnp.maximum(h, 0.0)
        f = jnp.dot(h.astype(jnp.bfloat16), w2, preferred_element_type=jnp.float32) + b2

        # --- dropout2 is identity; residual + norm2 ---
        y = x1 + f
        mu2 = jnp.mean(y, axis=-1, keepdims=True)
        var2 = jnp.mean((y - mu2) ** 2, axis=-1, keepdims=True)
        out = (y - mu2) * jax.lax.rsqrt(var2 + LN_EPS) * g2 + be2

        out_ref[...] = out.astype(out_ref.dtype)

    return kernel


def make_encode_layer(params, *, n_agents, seq_len, channels, n_head,
                      num_row_tiles=1):
    """Builds the EncodeLayer forward pass.

    All constant packing (kron / tile / reduction matrices) happens ONCE here;
    the returned callable only repacks k/v into the agent-packed layout and
    invokes the Pallas kernel.

    num_row_tiles: row tiles over L. 1 (default) is best on single-TC v5e/v6e
    at these sizes; 2 ("parallel") feeds both v7x TensorCores once L is large.
    """
    N, L, C = n_agents, seq_len, channels
    assert C % n_head == 0
    assert L % num_row_tiles == 0
    tile_l = L // num_row_tiles
    assert tile_l % 8 == 0
    head_dim = C // n_head
    NC = N * C
    NH = N * n_head
    scale = 1.0 / math.sqrt(head_dim)

    # ---- one-time parameter packing (hoisted out of the per-call path) ----
    eye_n = jnp.eye(N, dtype=jnp.float32)
    wq_rep = jnp.tile(params["wq"] * scale, (1, N)).astype(jnp.bfloat16)          # (C, NC)
    wk_bd = jnp.kron(eye_n, params["wk"]).astype(jnp.bfloat16)                    # (NC, NC)
    wv_bd = jnp.kron(eye_n, params["wv"]).astype(jnp.bfloat16)                    # (NC, NC)
    w_off = jnp.concatenate([jnp.tile(params["wo"], (N, 1)),                      # wo (x) agent-sum
                             params["w1"], params["w2"]],
                            axis=0).astype(jnp.bfloat16)                          # (NC + 2C, C)

    bias_big = jnp.concatenate([jnp.tile(params["bq"] * scale, (1, N)),
                                jnp.tile(params["bk"], (1, N)),
                                jnp.tile(params["bv"], (1, N))], axis=0)          # (3, NC) f32
    bias_small = jnp.concatenate([params["bo"], params["b1"], params["b2"],
                                  params["g1"], params["be1"],
                                  params["g2"], params["be2"],
                                  jnp.zeros((1, C), jnp.float32)], axis=0)        # (8, C) f32

    # Block-structured reduction matrices. Entries are {0, 1} or
    # {0.75, -0.25, 0} -> exact in bf16, so these matmuls are single-pass
    # bf16 vmatmuls on every TPU generation.
    ch = jnp.arange(NC)
    col = (ch // C) * n_head + (ch % C) // head_dim        # agent-major (agent, head) column id
    M_big = (col[:, None] == jnp.arange(NH)[None, :]).astype(jnp.float32)         # (NC, NH)
    cols = jnp.arange(NH)
    same_head = (cols[:, None] % n_head
                 == cols[None, :] % n_head).astype(jnp.float32)                   # (NH, NH)
    # Fold the softmax shift (mean over agents; softmax is shift-invariant)
    # into the score-reduction matrix -> no per-head max/slice work in-kernel.
    M_cen = (M_big - M_big @ (same_head / N)).astype(jnp.bfloat16)                # (NC, NH)
    A_sum = same_head.astype(jnp.bfloat16)                                        # (NH, NH)
    Mt_big = M_big.T.astype(jnp.bfloat16)                                         # (NH, NC)

    kernel = _make_kernel(N, n_head, C)

    # Constant-index parameter blocks: full-shape, same block index every grid
    # step (the pipeliner does not re-fetch them across steps).
    def const_spec(shape):
        return pl.BlockSpec(shape, lambda i: (0, 0))

    in_specs = [
        pl.BlockSpec((tile_l, C), lambda i: (i, 0)),      # q
        pl.BlockSpec((tile_l, NC), lambda i: (i, 0)),     # packed k
        pl.BlockSpec((tile_l, NC), lambda i: (i, 0)),     # packed v
        const_spec(wq_rep.shape),
        const_spec(wk_bd.shape),
        const_spec(wv_bd.shape),
        const_spec(w_off.shape),
        const_spec(bias_big.shape),
        const_spec(bias_small.shape),
        const_spec(M_cen.shape),
        const_spec(A_sum.shape),
        const_spec(Mt_big.shape),
    ]

    call = pl.pallas_call(
        kernel,
        out_shape=jax.ShapeDtypeStruct((L, C), jnp.float32),
        grid_spec=pltpu.PrefetchScalarGridSpec(
            num_scalar_prefetch=0,
            grid=(num_row_tiles,),
            in_specs=in_specs,
            out_specs=pl.BlockSpec((tile_l, C), lambda i: (i, 0)),
        ),
        compiler_params=pltpu.CompilerParams(
            dimension_semantics=("parallel",)),
    )

    @jax.jit
    def encode_layer(q, k, v):
        # Per-call work is only the k/v agent-repack (callers that already
        # hold features in (L, N*C) layout can skip the transpose/reshape).
        q2 = q[0]                                                        # (L, C) f32
        kp = jnp.transpose(k, (1, 0, 2)).reshape(L, NC).astype(jnp.bfloat16)
        vp = jnp.transpose(v, (1, 0, 2)).reshape(L, NC).astype(jnp.bfloat16)
        out = call(q2, kp, vp, wq_rep, wk_bd, wv_bd, w_off,
                   bias_big, bias_small, M_cen, A_sum, Mt_big)
        return out[None]                                                 # (1, L, C)

    return encode_layer


def encode_layer_ref(q, k, v, params, n_head):
    """Pure-JAX f32 reference mirroring PyTorch nn.MultiheadAttention + encoder block."""
    _, L, C = q.shape
    N = k.shape[0]
    head_dim = C // n_head
    scale = 1.0 / math.sqrt(head_dim)

    q2 = q[0]
    Q = q2 @ params["wq"] + params["bq"][0]
    K = k @ params["wk"] + params["bk"][0]
    V = v @ params["wv"] + params["bv"][0]

    Qh = (Q * scale).reshape(L, n_head, head_dim)
    Kh = K.reshape(N, L, n_head, head_dim)
    Vh = V.reshape(N, L, n_head, head_dim)

    s = jnp.einsum("lhd,nlhd->lhn", Qh, Kh)
    p_attn = jax.nn.softmax(s, axis=-1)
    ctx = jnp.einsum("lhn,nlhd->lhd", p_attn, Vh).reshape(L, C)
    attn_out = ctx @ params["wo"] + params["bo"][0]

    def layer_norm(x, g, b):
        mu = jnp.mean(x, axis=-1, keepdims=True)
        var = jnp.mean((x - mu) ** 2, axis=-1, keepdims=True)
        return (x - mu) * jax.lax.rsqrt(var + LN_EPS) * g[0] + b[0]

    x1 = layer_norm(q2 + attn_out, params["g1"], params["be1"])
    h = jnp.maximum(x1 @ params["w1"] + params["b1"][0], 0.0)
    f = h @ params["w2"] + params["b2"][0]
    out = layer_norm(x1 + f, params["g2"], params["be2"])
    return out[None]


def init_params(key, C):
    """Deterministic synthetic parameters. Matrices are stored (in, out) so the
    kernel computes x @ W (PyTorch stores (out, in))."""
    keys = jax.random.split(key, 16)
    s = 1.0 / math.sqrt(C)

    def mat(k):
        return jax.random.normal(k, (C, C), jnp.float32) * s

    def vec(k):
        return jax.random.normal(k, (1, C), jnp.float32) * 0.02

    return {
        "wq": mat(keys[0]), "bq": vec(keys[1]),
        "wk": mat(keys[2]), "bk": vec(keys[3]),
        "wv": mat(keys[4]), "bv": vec(keys[5]),
        "wo": mat(keys[6]), "bo": vec(keys[7]),
        "w1": mat(keys[8]), "b1": vec(keys[9]),
        "w2": mat(keys[10]), "b2": vec(keys[11]),
        "g1": jnp.ones((1, C), jnp.float32) + 0.05 * jax.random.normal(keys[12], (1, C)),
        "be1": vec(keys[13]),
        "g2": jnp.ones((1, C), jnp.float32) + 0.05 * jax.random.normal(keys[14], (1, C)),
        "be2": vec(keys[15]),
    }


if __name__ == "__main__":
    # Small shapes consistent with the module: N agents, H*W spatial positions, C channels.
    N = 4            # agents (attention sequence length)
    H, W = 8, 16
    L = H * W        # 128 spatial positions
    C = 32           # channels
    n_head = 8       # head_dim = 4

    key = jax.random.PRNGKey(0)
    key_q, key_k, key_v, key_p = jax.random.split(key, 4)
    q = jax.random.normal(key_q, (1, L, C), jnp.float32)
    k = jax.random.normal(key_k, (N, L, C), jnp.float32)
    v = jax.random.normal(key_v, (N, L, C), jnp.float32)
    params = init_params(key_p, C)

    # Build once (all constant packing is hoisted here), call many times.
    encode_layer = make_encode_layer(params, n_agents=N, seq_len=L, channels=C,
                                     n_head=n_head, num_row_tiles=1)
    out = jax.block_until_ready(encode_layer(q, k, v))

    ref = encode_layer_ref(q, k, v, params, n_head)
    assert out.shape == (1, L, C)
    # bf16 operands at the MXU (weights, score reduction, prob expansion, FFN)
    # are an intentional precision/perf trade; accumulation, softmax and
    # LayerNorm stay f32, so errors vs. the pure-f32 reference remain small.
    max_err = float(jnp.max(jnp.abs(out - ref)))
    mean_err = float(jnp.mean(jnp.abs(out - ref)))
    assert max_err < 2.5e-1 and mean_err < 4e-2, f"mismatch: max={max_err} mean={mean_err}"

    print("KERNEL_OK")
</pallas_src>

<mosaic_0001>
module attributes {stable_mosaic.version = 11 : i64} {
  func.func @kernel(%arg0: i32, %arg1: memref<128x32xf32, #tpu.memory_space<vmem>>, %arg2: memref<128x128xbf16, #tpu.memory_space<vmem>>, %arg3: memref<128x128xbf16, #tpu.memory_space<vmem>>, %arg4: memref<32x128xbf16, #tpu.memory_space<vmem>>, %arg5: memref<128x128xbf16, #tpu.memory_space<vmem>>, %arg6: memref<128x128xbf16, #tpu.memory_space<vmem>>, %arg7: memref<192x32xbf16, #tpu.memory_space<vmem>>, %arg8: memref<3x128xf32, #tpu.memory_space<vmem>>, %arg9: memref<8x32xf32, #tpu.memory_space<vmem>>, %arg10: memref<128x32xbf16, #tpu.memory_space<vmem>>, %arg11: memref<32x32xbf16, #tpu.memory_space<vmem>>, %arg12: memref<32x128xbf16, #tpu.memory_space<vmem>>, %arg13: memref<128x32xf32, #tpu.memory_space<vmem>>) attributes {dimension_semantics = [#tpu.dimension_semantics<parallel>], iteration_bounds = array<i64: 1>, scalar_prefetch = 0 : i64, scratch_operands = 0 : i64, tpu.core_type = #tpu.core_type<tc>, window_params = [{transform_indices = @transform_0, window_bounds = array<i64: 128, 32>}, {transform_indices = @transform_1, window_bounds = array<i64: 128, 128>}, {transform_indices = @transform_2, window_bounds = array<i64: 128, 128>}, {pipeline_mode = #tpu.pipeline_mode<synchronous>, transform_indices = @transform_3, window_bounds = array<i64: 32, 128>}, {pipeline_mode = #tpu.pipeline_mode<synchronous>, transform_indices = @transform_4, window_bounds = array<i64: 128, 128>}, {pipeline_mode = #tpu.pipeline_mode<synchronous>, transform_indices = @transform_5, window_bounds = array<i64: 128, 128>}, {pipeline_mode = #tpu.pipeline_mode<synchronous>, transform_indices = @transform_6, window_bounds = array<i64: 192, 32>}, {pipeline_mode = #tpu.pipeline_mode<synchronous>, transform_indices = @transform_7, window_bounds = array<i64: 3, 128>}, {pipeline_mode = #tpu.pipeline_mode<synchronous>, transform_indices = @transform_8, window_bounds = array<i64: 8, 32>}, {pipeline_mode = #tpu.pipeline_mode<synchronous>, transform_indices = @transform_9, window_bounds = array<i64: 128, 32>}, {pipeline_mode = #tpu.pipeline_mode<synchronous>, transform_indices = @transform_10, window_bounds = array<i64: 32, 32>}, {pipeline_mode = #tpu.pipeline_mode<synchronous>, transform_indices = @transform_11, window_bounds = array<i64: 32, 128>}, {transform_indices = @transform_12, window_bounds = array<i64: 128, 32>}]} {
    %c0 = arith.constant 0 : index
    %c0_0 = arith.constant 0 : index
    %0 = vector.load %arg1[%c0, %c0_0] : memref<128x32xf32, #tpu.memory_space<vmem>>, vector<128x32xf32>
    %1 = arith.truncf %0 : vector<128x32xf32> to vector<128x32xbf16>
    %c0_1 = arith.constant 0 : index
    %c0_2 = arith.constant 0 : index
    %2 = vector.load %arg8[%c0_1, %c0_2] : memref<3x128xf32, #tpu.memory_space<vmem>>, vector<3x128xf32>
    %3 = vector.extract_strided_slice %2 {offsets = [0, 0], sizes = [1, 128], strides = [1, 1]} : vector<3x128xf32> to vector<1x128xf32>
    %4 = vector.extract_strided_slice %2 {offsets = [1, 0], sizes = [1, 128], strides = [1, 1]} : vector<3x128xf32> to vector<1x128xf32>
    %5 = vector.extract_strided_slice %2 {offsets = [2, 0], sizes = [1, 128], strides = [1, 1]} : vector<3x128xf32> to vector<1x128xf32>
    %c0_3 = arith.constant 0 : index
    %c0_4 = arith.constant 0 : index
    %6 = vector.load %arg9[%c0_3, %c0_4] : memref<8x32xf32, #tpu.memory_space<vmem>>, vector<8x32xf32>
    %7 = vector.extract_strided_slice %6 {offsets = [0, 0], sizes = [1, 32], strides = [1, 1]} : vector<8x32xf32> to vector<1x32xf32>
    %8 = vector.extract_strided_slice %6 {offsets = [1, 0], sizes = [1, 32], strides = [1, 1]} : vector<8x32xf32> to vector<1x32xf32>
    %9 = vector.extract_strided_slice %6 {offsets = [2, 0], sizes = [1, 32], strides = [1, 1]} : vector<8x32xf32> to vector<1x32xf32>
    %10 = vector.extract_strided_slice %6 {offsets = [3, 0], sizes = [1, 32], strides = [1, 1]} : vector<8x32xf32> to vector<1x32xf32>
    %11 = vector.extract_strided_slice %6 {offsets = [4, 0], sizes = [1, 32], strides = [1, 1]} : vector<8x32xf32> to vector<1x32xf32>
    %12 = vector.extract_strided_slice %6 {offsets = [5, 0], sizes = [1, 32], strides = [1, 1]} : vector<8x32xf32> to vector<1x32xf32>
    %13 = vector.extract_strided_slice %6 {offsets = [6, 0], sizes = [1, 32], strides = [1, 1]} : vector<8x32xf32> to vector<1x32xf32>
    %c0_5 = arith.constant 0 : index
    %c0_6 = arith.constant 0 : index
    %14 = vector.load %arg7[%c0_5, %c0_6] : memref<192x32xbf16, #tpu.memory_space<vmem>>, vector<192x32xbf16>
    %15 = vector.extract_strided_slice %14 {offsets = [0, 0], sizes = [128, 32], strides = [1, 1]} : vector<192x32xbf16> to vector<128x32xbf16>
    %16 = vector.extract_strided_slice %14 {offsets = [128, 0], sizes = [32, 32], strides = [1, 1]} : vector<192x32xbf16> to vector<32x32xbf16>
    %17 = vector.extract_strided_slice %14 {offsets = [160, 0], sizes = [32, 32], strides = [1, 1]} : vector<192x32xbf16> to vector<32x32xbf16>
    %c0_7 = arith.constant 0 : index
    %c0_8 = arith.constant 0 : index
    %18 = vector.load %arg4[%c0_7, %c0_8] : memref<32x128xbf16, #tpu.memory_space<vmem>>, vector<32x128xbf16>
    %cst = arith.constant dense<0.000000e+00> : vector<128x128xf32>
    %19 = tpu.matmul %1, %18, %cst {dimension_numbers = #tpu.dot_dimension_numbers<[1], [0], [0], [1], [0, 0, 1, 1], [], []>} : vector<128x32xbf16>, vector<32x128xbf16>, vector<128x128xf32> -> vector<128x128xf32>
    %20 = vector.broadcast %3 : vector<1x128xf32> to vector<128x128xf32>
    %21 = arith.addf %19, %20 : vector<128x128xf32>
    %c0_9 = arith.constant 0 : index
    %c0_10 = arith.constant 0 : index
    %22 = vector.load %arg2[%c0_9, %c0_10] : memref<128x128xbf16, #tpu.memory_space<vmem>>, vector<128x128xbf16>
    %c0_11 = arith.constant 0 : index
    %c0_12 = arith.constant 0 : index
    %23 = vector.load %arg5[%c0_11, %c0_12] : memref<128x128xbf16, #tpu.memory_space<vmem>>, vector<128x128xbf16>
    %cst_13 = arith.constant dense<0.000000e+00> : vector<128x128xf32>
    %24 = tpu.matmul %22, %23, %cst_13 {dimension_numbers = #tpu.dot_dimension_numbers<[1], [0], [0], [1], [0, 0, 1, 1], [], []>} : vector<128x128xbf16>, vector<128x128xbf16>, vector<128x128xf32> -> vector<128x128xf32>
    %25 = vector.broadcast %4 : vector<1x128xf32> to vector<128x128xf32>
    %26 = arith.addf %24, %25 : vector<128x128xf32>
    %c0_14 = arith.constant 0 : index
    %c0_15 = arith.constant 0 : index
    %27 = vector.load %arg3[%c0_14, %c0_15] : memref<128x128xbf16, #tpu.memory_space<vmem>>, vector<128x128xbf16>
    %c0_16 = arith.constant 0 : index
    %c0_17 = arith.constant 0 : index
    %28 = vector.load %arg6[%c0_16, %c0_17] : memref<128x128xbf16, #tpu.memory_space<vmem>>, vector<128x128xbf16>
    %cst_18 = arith.constant dense<0.000000e+00> : vector<128x128xf32>
    %29 = tpu.matmul %27, %28, %cst_18 {dimension_numbers = #tpu.dot_dimension_numbers<[1], [0], [0], [1], [0, 0, 1, 1], [], []>} : vector<128x128xbf16>, vector<128x128xbf16>, vector<128x128xf32> -> vector<128x128xf32>
    %30 = vector.broadcast %5 : vector<1x128xf32> to vector<128x128xf32>
    %31 = arith.addf %29, %30 : vector<128x128xf32>
    %32 = arith.truncf %31 : vector<128x128xf32> to vector<128x128xbf16>
    %33 = arith.mulf %21, %26 : vector<128x128xf32>
    %34 = arith.truncf %33 : vector<128x128xf32> to vector<128x128xbf16>
    %c0_19 = arith.constant 0 : index
    %c0_20 = arith.constant 0 : index
    %35 = vector.load %arg10[%c0_19, %c0_20] : memref<128x32xbf16, #tpu.memory_space<vmem>>, vector<128x32xbf16>
    %cst_21 = arith.constant dense<0.000000e+00> : vector<128x32xf32>
    %36 = tpu.matmul %34, %35, %cst_21 {dimension_numbers = #tpu.dot_dimension_numbers<[1], [0], [0], [1], [0, 0, 1, 1], [], []>} : vector<128x128xbf16>, vector<128x32xbf16>, vector<128x32xf32> -> vector<128x32xf32>
    %37 = math.exp %36 : vector<128x32xf32>
    %38 = arith.truncf %37 : vector<128x32xf32> to vector<128x32xbf16>
    %c0_22 = arith.constant 0 : index
    %c0_23 = arith.constant 0 : index
    %39 = vector.load %arg11[%c0_22, %c0_23] : memref<32x32xbf16, #tpu.memory_space<vmem>>, vector<32x32xbf16>
    %cst_24 = arith.constant dense<0.000000e+00> : vector<128x32xf32>
    %40 = tpu.matmul %38, %39, %cst_24 {dimension_numbers = #tpu.dot_dimension_numbers<[1], [0], [0], [1], [0, 0, 1, 1], [], []>} : vector<128x32xbf16>, vector<32x32xbf16>, vector<128x32xf32> -> vector<128x32xf32>
    %41 = tpu.reciprocal %40 {approx = true} : vector<128x32xf32> -> vector<128x32xf32>
    %42 = arith.mulf %37, %41 : vector<128x32xf32>
    %43 = arith.truncf %42 : vector<128x32xf32> to vector<128x32xbf16>
    %c0_25 = arith.constant 0 : index
    %c0_26 = arith.constant 0 : index
    %44 = vector.load %arg12[%c0_25, %c0_26] : memref<32x128xbf16, #tpu.memory_space<vmem>>, vector<32x128xbf16>
    %cst_27 = arith.constant dense<0.000000e+00> : vector<128x128xf32>
    %45 = tpu.matmul %43, %44, %cst_27 {dimension_numbers = #tpu.dot_dimension_numbers<[1], [0], [0], [1], [0, 0, 1, 1], [], []>} : vector<128x32xbf16>, vector<32x128xbf16>, vector<128x128xf32> -> vector<128x128xf32>
    %46 = arith.truncf %45 : vector<128x128xf32> to vector<128x128xbf16>
    %47 = arith.mulf %46, %32 : vector<128x128xbf16>
    %cst_28 = arith.constant dense<0.000000e+00> : vector<128x32xf32>
    %48 = tpu.matmul %47, %15, %cst_28 {dimension_numbers = #tpu.dot_dimension_numbers<[1], [0], [0], [1], [0, 0, 1, 1], [], []>} : vector<128x128xbf16>, vector<128x32xbf16>, vector<128x32xf32> -> vector<128x32xf32>
    %49 = vector.broadcast %7 : vector<1x32xf32> to vector<128x32xf32>
    %50 = arith.addf %48, %49 : vector<128x32xf32>
    %51 = arith.addf %0, %50 : vector<128x32xf32>
    %cst_29 = arith.constant dense<0.000000e+00> : vector<128xf32>
    %52 = vector.multi_reduction <add>, %51, %cst_29 [1] : vector<128x32xf32> to vector<128xf32>
    %53 = vector.shape_cast %52 : vector<128xf32> to vector<128x1xf32>
    %cst_30 = arith.constant 3.200000e+01 : f32
    %54 = vector.broadcast %cst_30 : f32 to vector<128x1xf32>
    %55 = arith.divf %53, %54 : vector<128x1xf32>
    %56 = vector.broadcast %55 : vector<128x1xf32> to vector<128x32xf32>
    %57 = arith.subf %51, %56 : vector<128x32xf32>
    %58 = arith.mulf %57, %57 : vector<128x32xf32>
    %cst_31 = arith.constant dense<0.000000e+00> : vector<128xf32>
    %59 = vector.multi_reduction <add>, %58, %cst_31 [1] : vector<128x32xf32> to vector<128xf32>
    %60 = vector.shape_cast %59 : vector<128xf32> to vector<128x1xf32>
    %cst_32 = arith.constant 3.200000e+01 : f32
    %61 = vector.broadcast %cst_32 : f32 to vector<128x1xf32>
    %62 = arith.divf %60, %61 : vector<128x1xf32>
    %63 = vector.broadcast %55 : vector<128x1xf32> to vector<128x32xf32>
    %64 = arith.subf %51, %63 : vector<128x32xf32>
    %cst_33 = arith.constant 9.99999974E-6 : f32
    %65 = vector.broadcast %cst_33 : f32 to vector<128x1xf32>
    %66 = arith.addf %62, %65 : vector<128x1xf32>
    %67 = math.rsqrt %66 : vector<128x1xf32>
    %68 = vector.broadcast %67 : vector<128x1xf32> to vector<128x32xf32>
    %69 = arith.mulf %64, %68 : vector<128x32xf32>
    %70 = vector.broadcast %10 : vector<1x32xf32> to vector<128x32xf32>
    %71 = arith.mulf %69, %70 : vector<128x32xf32>
    %72 = vector.broadcast %11 : vector<1x32xf32> to vector<128x32xf32>
    %73 = arith.addf %71, %72 : vector<128x32xf32>
    %74 = arith.truncf %73 : vector<128x32xf32> to vector<128x32xbf16>
    %cst_34 = arith.constant dense<0.000000e+00> : vector<128x32xf32>
    %75 = tpu.matmul %74, %16, %cst_34 {dimension_numbers = #tpu.dot_dimension_numbers<[1], [0], [0], [1], [0, 0, 1, 1], [], []>} : vector<128x32xbf16>, vector<32x32xbf16>, vector<128x32xf32> -> vector<128x32xf32>
    %76 = vector.broadcast %8 : vector<1x32xf32> to vector<128x32xf32>
    %77 = arith.addf %75, %76 : vector<128x32xf32>
    %cst_35 = arith.constant 0.000000e+00 : f32
    %78 = vector.broadcast %cst_35 : f32 to vector<128x32xf32>
    %79 = arith.maximumf %77, %78 : vector<128x32xf32>
    %80 = arith.truncf %79 : vector<128x32xf32> to vector<128x32xbf16>
    %cst_36 = arith.constant dense<0.000000e+00> : vector<128x32xf32>
    %81 = tpu.matmul %80, %17, %cst_36 {dimension_numbers = #tpu.dot_dimension_numbers<[1], [0], [0], [1], [0, 0, 1, 1], [], []>} : vector<128x32xbf16>, vector<32x32xbf16>, vector<128x32xf32> -> vector<128x32xf32>
    %82 = vector.broadcast %9 : vector<1x32xf32> to vector<128x32xf32>
    %83 = arith.addf %81, %82 : vector<128x32xf32>
    %84 = arith.addf %73, %83 : vector<128x32xf32>
    %cst_37 = arith.constant dense<0.000000e+00> : vector<128xf32>
    %85 = vector.multi_reduction <add>, %84, %cst_37 [1] : vector<128x32xf32> to vector<128xf32>
    %86 = vector.shape_cast %85 : vector<128xf32> to vector<128x1xf32>
    %cst_38 = arith.constant 3.200000e+01 : f32
    %87 = vector.broadcast %cst_38 : f32 to vector<128x1xf32>
    %88 = arith.divf %86, %87 : vector<128x1xf32>
    %89 = vector.broadcast %88 : vector<128x1xf32> to vector<128x32xf32>
    %90 = arith.subf %84, %89 : vector<128x32xf32>
    %91 = arith.mulf %90, %90 : vector<128x32xf32>
    %cst_39 = arith.constant dense<0.000000e+00> : vector<128xf32>
    %92 = vector.multi_reduction <add>, %91, %cst_39 [1] : vector<128x32xf32> to vector<128xf32>
    %93 = vector.shape_cast %92 : vector<128xf32> to vector<128x1xf32>
    %cst_40 = arith.constant 3.200000e+01 : f32
    %94 = vector.broadcast %cst_40 : f32 to vector<128x1xf32>
    %95 = arith.divf %93, %94 : vector<128x1xf32>
    %96 = vector.broadcast %88 : vector<128x1xf32> to vector<128x32xf32>
    %97 = arith.subf %84, %96 : vector<128x32xf32>
    %cst_41 = arith.constant 9.99999974E-6 : f32
    %98 = vector.broadcast %cst_41 : f32 to vector<128x1xf32>
    %99 = arith.addf %95, %98 : vector<128x1xf32>
    %100 = math.rsqrt %99 : vector<128x1xf32>
    %101 = vector.broadcast %100 : vector<128x1xf32> to vector<128x32xf32>
    %102 = arith.mulf %97, %101 : vector<128x32xf32>
    %103 = vector.broadcast %12 : vector<1x32xf32> to vector<128x32xf32>
    %104 = arith.mulf %102, %103 : vector<128x32xf32>
    %105 = vector.broadcast %13 : vector<1x32xf32> to vector<128x32xf32>
    %106 = arith.addf %104, %105 : vector<128x32xf32>
    %c0_42 = arith.constant 0 : index
    %c0_43 = arith.constant 0 : index
    %107 = vector.load %arg13[%c0_42, %c0_43] : memref<128x32xf32, #tpu.memory_space<vmem>>, vector<128x32xf32>
    tpu.vector_store %arg13[%c0_42, %c0_43], %106 {strides = array<i32>} : memref<128x32xf32, #tpu.memory_space<vmem>>, vector<128x32xf32>,
    return
  }
  func.func @transform_0(%arg0: i32) -> (i32, i32) {
    %c0_i32 = arith.constant 0 : i32
    %c0_i32_0 = arith.constant 0 : i32
    return %arg0, %c0_i32 : i32, i32
  }
  func.func @transform_1(%arg0: i32) -> (i32, i32) {
    %c0_i32 = arith.constant 0 : i32
    %c0_i32_0 = arith.constant 0 : i32
    return %arg0, %c0_i32 : i32, i32
  }
  func.func @transform_2(%arg0: i32) -> (i32, i32) {
    %c0_i32 = arith.constant 0 : i32
    %c0_i32_0 = arith.constant 0 : i32
    return %arg0, %c0_i32 : i32, i32
  }
  func.func @transform_3(%arg0: i32) -> (i32, i32) {
    %c0_i32 = arith.constant 0 : i32
    %c0_i32_0 = arith.constant 0 : i32
    %c0_i32_1 = arith.constant 0 : i32
    return %c0_i32, %c0_i32_0 : i32, i32
  }
  func.func @transform_4(%arg0: i32) -> (i32, i32) {
    %c0_i32 = arith.constant 0 : i32
    %c0_i32_0 = arith.constant 0 : i32
    %c0_i32_1 = arith.constant 0 : i32
    return %c0_i32, %c0_i32_0 : i32, i32
  }
  func.func @transform_5(%arg0: i32) -> (i32, i32) {
    %c0_i32 = arith.constant 0 : i32
    %c0_i32_0 = arith.constant 0 : i32
    %c0_i32_1 = arith.constant 0 : i32
    return %c0_i32, %c0_i32_0 : i32, i32
  }
  func.func @transform_6(%arg0: i32) -> (i32, i32) {
    %c0_i32 = arith.constant 0 : i32
    %c0_i32_0 = arith.constant 0 : i32
    %c0_i32_1 = arith.constant 0 : i32
    return %c0_i32, %c0_i32_0 : i32, i32
  }
  func.func @transform_7(%arg0: i32) -> (i32, i32) {
    %c0_i32 = arith.constant 0 : i32
    %c0_i32_0 = arith.constant 0 : i32
    %c0_i32_1 = arith.constant 0 : i32
    return %c0_i32, %c0_i32_0 : i32, i32
  }
  func.func @transform_8(%arg0: i32) -> (i32, i32) {
    %c0_i32 = arith.constant 0 : i32
    %c0_i32_0 = arith.constant 0 : i32
    %c0_i32_1 = arith.constant 0 : i32
    return %c0_i32, %c0_i32_0 : i32, i32
  }
  func.func @transform_9(%arg0: i32) -> (i32, i32) {
    %c0_i32 = arith.constant 0 : i32
    %c0_i32_0 = arith.constant 0 : i32
    %c0_i32_1 = arith.constant 0 : i32
    return %c0_i32, %c0_i32_0 : i32, i32
  }
  func.func @transform_10(%arg0: i32) -> (i32, i32) {
    %c0_i32 = arith.constant 0 : i32
    %c0_i32_0 = arith.constant 0 : i32
    %c0_i32_1 = arith.constant 0 : i32
    return %c0_i32, %c0_i32_0 : i32, i32
  }
  func.func @transform_11(%arg0: i32) -> (i32, i32) {
    %c0_i32 = arith.constant 0 : i32
    %c0_i32_0 = arith.constant 0 : i32
    %c0_i32_1 = arith.constant 0 : i32
    return %c0_i32, %c0_i32_0 : i32, i32
  }
  func.func @transform_12(%arg0: i32) -> (i32, i32) {
    %c0_i32 = arith.constant 0 : i32
    %c0_i32_0 = arith.constant 0 : i32
    return %arg0, %c0_i32 : i32, i32
  }
}

</mosaic_0001>

<bundles_post_ra>
// kernel: encode_layer.1
= control target key start
LH: loop header
LB: loop body
LE: loop exit
PB: predicated region body
PF: predicated region fallthrough
CT: control target
= control target key end

     0   :  { %vm112_vm0 = vcmask 261120   ;;  %s4097_s4 = inlined_call_operand.vmem [shape: bf16[128,128], index: 4, kind: input, shape index: {}]   ;;  %s4098_s3 = inlined_call_operand.vmem [shape: bf16[32,128], index: 3, kind: input, shape index: {}]   ;;  %s4099_s0 = inlined_call_operand.vmem [shape: f32[128,32], index: 0, kind: input, shape index: {}]   ;;  %s4100_s1 = inlined_call_operand.vmem [shape: bf16[128,128], index: 1, kind: input, shape index: {}]   ;;  %s4101_s9 = inlined_call_operand.vmem [shape: bf16[128,32], index: 9, kind: input, shape index: {}]   ;;  %s4102_s5 = inlined_call_operand.vmem [shape: bf16[128,128], index: 5, kind: input, shape index: {}]   ;;  %s4103_s2 = inlined_call_operand.vmem [shape: bf16[128,128], index: 2, kind: input, shape index: {}]   ;;  %s4104_s10 = inlined_call_operand.vmem [shape: bf16[32,32], index: 10, kind: input, shape index: {}]   ;;  %s4105_s7 = inlined_call_operand.vmem [shape: f32[3,128], index: 7, kind: input, shape index: {}]   ;;  %s4106_s11 = inlined_call_operand.vmem [shape: bf16[32,128], index: 11, kind: input, shape index: {}]   ;;  %s4107_s6 = inlined_call_operand.vmem [shape: bf16[192,32], index: 6, kind: input, shape index: {}]   ;;  %s4108_s8 = inlined_call_operand.vmem [shape: f32[8,32], index: 8, kind: input, shape index: {}]   ;;  %s4109_s12 = inlined_call_operand.vmem [shape: f32[128,32], index: 12, kind: output, shape index: {}]  }
   0x1   :  { %v2699_v0 = vld [vmem:[%s4097_s4] sm:$0xff]   ;;  %v2700_v1 = vld [vmem:[%s4097_s4 + $0x8] sm:$0xff]   ;;  %v2701_v2 = vld [vmem:[%s4097_s4 + $0x10] sm:$0xff]  }
   0x2   :  { %2491 = vmatprep.subr.bf16.mxu1 %v2699_v0  ;;  %v2705_v3 = vld [vmem:[%s4098_s3] sm:$0xff]   ;;  %v2702_v4 = vld [vmem:[%s4097_s4 + $0x18] sm:$0xff]   ;;  %v2707_v5 = vld [vmem:[%s4098_s3 + $0x8] sm:$0xff]  }
   0x3   :  { %2492 = vmatpush3.bf16.msra.mxu1 %v2699_v0  ;;  %2471 = vmatprep.subr.bf16.mxu0 %v2705_v3  ;;  %v42_v6 = vld [vmem:[%s4099_s0] sm:$0xff]  ;;  %v43_v7 = vld [vmem:[%s4099_s0 + $0x8] sm:$0xff]  ;;  %v44_v10 = vld [vmem:[%s4099_s0 + $0x10] sm:$0xff] }
   0x4   :  { %2493 = vmatprep.subr.bf16.mxu1 %v2700_v1  ;;  %2472 = vmatpush3.bf16.msra.mxu0 %v2705_v3  ;;  %v2703_v8 = vld [vmem:[%s4097_s4 + $0x20] sm:$0xff]   ;;  %v58_v9 = vpack.c.bf16 %v43_v7, %v42_v6  ;;  %v45_v11 = vld [vmem:[%s4099_s0 + $0x18] sm:$0xff]  ;;  %v47_v15 = vld [vmem:[%s4099_s0 + $0x28] sm:$0xff] }
   0x5   :  { %2473 = vmatprep.subr.bf16.mxu0 %v2707_v5  ;;  %v59_v12 = vpack.c.bf16 %v45_v11, %v44_v10  ;;  %v2709_v13 = vld [vmem:[%s4100_s1] sm:$0xff]   ;;  %v2704_v17 = vld [vmem:[%s4097_s4 + $0x28] sm:$0xff]   ;;  %v48_v18 = vld [vmem:[%s4099_s0 + $0x30] sm:$0xff] }
   0x6   :  { %2475 = vmatprep.mubr.msk.bf16.mxu0 %vm112_vm0, %v58_v9  ;;  %v46_v14 = vld [vmem:[%s4099_s0 + $0x20] sm:$0xff]  ;;  %2507 = vmatprep.mubr.bf16.mxu1 %v2709_v13  ;;  %v49_v19 = vld [vmem:[%s4099_s0 + $0x38] sm:$0xff]  ;;  %v51_v21 = vld [vmem:[%s4099_s0 + $0x48] sm:$0xff] }
   0x7   :  { %2494 = vmatpush3.bf16.msra.mxu1 %v2700_v1  ;;  %v60_v16 = vpack.c.bf16 %v47_v15, %v46_v14  ;;  %v50_v20 = vld [vmem:[%s4099_s0 + $0x40] sm:$0xff]  ;;  %v2706_v22 = vld [vmem:[%s4097_s4 + $0x30] sm:$0xff]   ;;  %v61_v23 = vpack.c.bf16 %v49_v19, %v48_v18  ;;  %v2708_v25 = vld [vmem:[%s4097_s4 + $0x38] sm:$0xff]   ;;  %v96_v1 = vlaneseq }
   0x8   :  { %2495 = vmatprep.subr.bf16.mxu1 %v2701_v2  ;;  %2474 = vmatpush3.bf16.msra.mxu0 %v2707_v5  ;;  %v62_v24 = vpack.c.bf16 %v51_v21, %v50_v20  ;;  %v52_v26 = vld [vmem:[%s4099_s0 + $0x50] sm:$0xff]  ;;  %v53_v27 = vld [vmem:[%s4099_s0 + $0x58] sm:$0xff]  ;;  %v54_v28 = vld [vmem:[%s4099_s0 + $0x60] sm:$0xff] }
   0x9   :  { %v55_v29 = vld [vmem:[%s4099_s0 + $0x68] sm:$0xff]  ;;  %v63_v30 = vpack.c.bf16 %v53_v27, %v52_v26  ;;  %v2717_v31 = vld [vmem:[%s4101_s9] sm:$0xff]   ;;  %v2711_v34 = vld [vmem:[%s4100_s1 + $0x10] sm:$0xff]   ;;  %v3143_v5 = vshrl.u32 %v96_v1, 7 }
   0xa   :  { %v64_v32 = vpack.c.bf16 %v55_v29, %v54_v28  ;;  %v2710_v33 = vld [vmem:[%s4100_s1 + $0x8] sm:$0xff]   ;;  %v56_v36 = vld [vmem:[%s4099_s0 + $0x70] sm:$0xff]  ;;  %v57_v37 = vld [vmem:[%s4099_s0 + $0x78] sm:$0xff] }
   0xb   :  { %2496 = vmatpush3.bf16.msra.mxu1 %v2701_v2  ;;  %2476 = vmatmul.mubr.msk.bf16.vlgmr.msra.gmra.mrb[0].mxu0 %vm112_vm0, %v59_v12  ;;  %v2718_v35 = vld [vmem:[%s4101_s9 + $0x8] sm:$0xff]   ;;  %v65_v38 = vpack.c.bf16 %v57_v37, %v56_v36  ;;  %v2719_v39 = vld [vmem:[%s4101_s9 + $0x10] sm:$0xff]   ;;  %v2712_v40 = vld [vmem:[%s4100_s1 + $0x18] sm:$0xff]   ;;  %v98_v7 = vsub.s32 0, %v3143_v5  ;;  %v268_v11 = vsub.s32 1, %v3143_v5 }
   0xc   :  { %2497 = vmatprep.subr.bf16.mxu1 %v2702_v4  ;;  %2479 = vmatprep.mubr.msk.bf16.mxu0 %vm112_vm0, %v60_v16  ;;  %v2713_v41 = vld [vmem:[%s4100_s1 + $0x20] sm:$0xff]   ;;  %v2720_v42 = vld [vmem:[%s4101_s9 + $0x18] sm:$0xff]   ;;  %v2714_v44 = vld [vmem:[%s4100_s1 + $0x28] sm:$0xff]  }
   0xd   :  { %v2721_v43 = vld [vmem:[%s4101_s9 + $0x20] sm:$0xff]   ;;  %v2715_v45 = vld [vmem:[%s4100_s1 + $0x30] sm:$0xff]   ;;  %v2716_v46 = vld [vmem:[%s4100_s1 + $0x38] sm:$0xff]  }
   0xe   :  { %v2722_v47 = vld [vmem:[%s4101_s9 + $0x28] sm:$0xff]   ;;  %v2723_v48 = vld [vmem:[%s4101_s9 + $0x30] sm:$0xff]   ;;  %v2724_v49 = vld [vmem:[%s4101_s9 + $0x38] sm:$0xff]  }
   0xf   :  { %2498 = vmatpush3.bf16.msra.mxu1 %v2702_v4  ;;  %v2725_v50 = vld [vmem:[%s4102_s5] sm:$0xff]   ;;  %v2726_v51 = vld [vmem:[%s4102_s5 + $0x8] sm:$0xff]   ;;  %v2727_v52 = vld [vmem:[%s4102_s5 + $0x10] sm:$0xff]  }
  0x10   :  { %2499 = vmatprep.subr.bf16.mxu1 %v2703_v8  ;;  %2523 = vmatprep.subr.bf16.mxu0 %v2725_v50  ;;  %v2728_v53 = vld [vmem:[%s4102_s5 + $0x18] sm:$0xff]   ;;  %v2733_v54 = vld [vmem:[%s4103_s2] sm:$0xff]   ;;  %v2730_v56 = vld [vmem:[%s4102_s5 + $0x28] sm:$0xff]  }
  0x11   :  { %2524 = vmatpush3.bf16.msra.mxu0 %v2725_v50  ;;  %v2729_v55 = vld [vmem:[%s4102_s5 + $0x20] sm:$0xff]   ;;  %v2731_v57 = vld [vmem:[%s4102_s5 + $0x30] sm:$0xff]   ;;  %v2732_v58 = vld [vmem:[%s4102_s5 + $0x38] sm:$0xff]  }
  0x12   :  { %2525 = vmatprep.subr.bf16.mxu0 %v2726_v51  ;;  %v2735_v59 = vld [vmem:[%s4104_s10] sm:$0xff]   ;;  %v2734_v60 = vld [vmem:[%s4103_s2 + $0x8] sm:$0xff]   ;;  %v2736_v61 = vld [vmem:[%s4103_s2 + $0x10] sm:$0xff]  }
  0x13   :  { %2500 = vmatpush3.bf16.msra.mxu1 %v2703_v8  ;;  %2480 = vmatmul.mubr.msk.bf16.gmra.mrb[4].mxu0 %vm112_vm0, %v61_v23  ;;  %v2737_v62 = vld [vmem:[%s4103_s2 + $0x18] sm:$0xff]   ;;  %v2738_v63 = vld [vmem:[%s4103_s2 + $0x20] sm:$0xff]  }
  0x14   :  { %2501 = vmatprep.subr.bf16.mxu1 %v2704_v17  ;;  %2483 = vmatprep.mubr.msk.bf16.mxu0 %vm112_vm0, %v62_v24  ;;  %v3149_v9 = vld [vmem:[%s4105_s7] sm:$0x7] }
  0x15   :  { %2526 = vmatpush3.bf16.msra.mxu0 %v2726_v51  ;;  %v3155_v13 = vrot.slane %v3149_v9, %v98_v7  ;;  %v3160_v14 = vrot.slane %v3149_v9, %v268_v11 }
  0x16   :  { %2527 = vmatprep.subr.bf16.mxu0 %v2727_v52 }
  0x17   :  { %2502 = vmatpush3.bf16.msra.mxu1 %v2704_v17 }
  0x18   :  { %2503 = vmatprep.subr.bf16.mxu1 %v2706_v22 }
  0x19   :  { %2528 = vmatpush3.bf16.msra.mxu0 %v2727_v52 }
  0x1a   :  { %2529 = vmatprep.subr.bf16.mxu0 %v2728_v53 }
  0x1b   :  { %2504 = vmatpush3.bf16.msra.mxu1 %v2706_v22  ;;  %2484 = vmatmul.mubr.msk.bf16.gmra.mrb[8].mxu0 %vm112_vm0, %v63_v30 }
  0x1c   :  { %2505 = vmatprep.subr.bf16.mxu1 %v2708_v25  ;;  %2487 = vmatprep.mubr.msk.bf16.mxu0 %vm112_vm0, %v64_v32 }
  0x1d   :  { %2530 = vmatpush3.bf16.msra.mxu0 %v2728_v53 }
  0x1e   :  { %2531 = vmatprep.subr.bf16.mxu0 %v2729_v55 }
  0x1f   :  { %2506 = vmatpush3.bf16.msra.mxu1 %v2708_v25 }
  0x20   :  { %2555 = vmatprep.subr.bf16.mxu1 %v2717_v31 }
  0x21   :  { %2532 = vmatpush3.bf16.msra.mxu0 %v2729_v55 }
  0x22   :  { %2508 = vmatmul.mubr.bf16.vlgmr.msra.gmra.mrb[0].mxu1 %v2710_v33  ;;  %2533 = vmatprep.subr.bf16.mxu0 %v2730_v56 }
  0x23   :  { %2511 = vmatprep.mubr.bf16.mxu1 %v2711_v34  ;;  %2556 = vmatpush3.bf16.msra.mxu1 %v2717_v31 }
  0x24   :  { %2557 = vmatprep.subr.bf16.mxu1 %v2718_v35  ;;  %2488 = vmatmul.mubr.msk.bf16.gmra.mrb[12].mxu0 %vm112_vm0, %v65_v38 }
  0x25   :  { %2539 = vmatprep.mubr.bf16.mxu0 %v2733_v54  ;;  %2534 = vmatpush3.bf16.msra.mxu0 %v2730_v56 }
  0x26   :  { %2535 = vmatprep.subr.bf16.mxu0 %v2731_v57 }
  0x27   :  { %2558 = vmatpush3.bf16.msra.mxu1 %v2718_v35 }
  0x28   :  { %2559 = vmatprep.subr.bf16.mxu1 %v2719_v39 }
  0x29   :  { %2536 = vmatpush3.bf16.msra.mxu0 %v2731_v57 }
  0x2a   :  { %2512 = vmatmul.mubr.bf16.gmra.mrb[4].mxu1 %v2712_v40  ;;  %2537 = vmatprep.subr.bf16.mxu0 %v2732_v58 }
  0x2b   :  { %2515 = vmatprep.mubr.bf16.mxu1 %v2713_v41  ;;  %2560 = vmatpush3.bf16.msra.mxu1 %v2719_v39 }
  0x2c   :  { %2561 = vmatprep.subr.bf16.mxu1 %v2720_v42 }
  0x2d   :  { %2538 = vmatpush3.bf16.msra.mxu0 %v2732_v58 }
  0x2e   :  { %2587 = vmatprep.subr.bf16.mxu0 %v2735_v59 }
  0x2f   :  { %2562 = vmatpush3.bf16.msra.mxu1 %v2720_v42 }
  0x30   :  { %2563 = vmatprep.subr.bf16.mxu1 %v2721_v43  ;;  %2540 = vmatmul.mubr.bf16.vlgmr.msra.gmra.mrb[16].mxu0 %v2734_v60 }
  0x31   :  { %2588 = vmatpush3.bf16.msra.mxu0 %v2735_v59  ;;  %2543 = vmatprep.mubr.bf16.mxu0 %v2736_v61 }
  0x32   :  { %2516 = vmatmul.mubr.bf16.gmra.mrb[8].mxu1 %v2714_v44 }
  0x33   :  { %2519 = vmatprep.mubr.bf16.mxu1 %v2715_v45  ;;  %2564 = vmatpush3.bf16.msra.mxu1 %v2721_v43 }
  0x34   :  { %2565 = vmatprep.subr.bf16.mxu1 %v2722_v47 }
  0x37   :  { %2566 = vmatpush3.bf16.msra.mxu1 %v2722_v47 }
  0x38   :  { %2567 = vmatprep.subr.bf16.mxu1 %v2723_v48  ;;  %2544 = vmatmul.mubr.bf16.gmra.mrb[20].mxu0 %v2737_v62 }
  0x39   :  { %2547 = vmatprep.mubr.bf16.mxu0 %v2738_v63 }
  0x3a   :  { %2520 = vmatmul.mubr.bf16.gmra.mrb[12].mxu1 %v2716_v46 }
  0x3b   :  { %2568 = vmatpush3.bf16.msra.mxu1 %v2723_v48 }
  0x3c   :  { %2569 = vmatprep.subr.bf16.mxu1 %v2724_v49 }
  0x3f   :  { %2570 = vmatpush3.bf16.msra.mxu1 %v2724_v49 }
  0xde   :  { %v2477_v0 = vpop.f32.mrb[0].mxu0 }
  0xdf   :  { %v171_v2 = vpop.f32.mrb[1].mxu0  ;;  %v180_v16 = vadd.f32 %v2477_v0, %v3155_v13 }
  0xe0   :  { %v2478_v3 = vpop.f32.mrb[2].mxu0  ;;  %v172_v18 = vadd.f32 %v171_v2, %v3155_v13 }
  0xe1   :  { %v174_v4 = vpop.f32.mrb[3].mxu0  ;;  %v183_v26 = vadd.f32 %v2478_v3, %v3155_v13 }
  0xe2   :  { %v175_v30 = vadd.f32 %v174_v4, %v3155_v13 }
  0xe6   :  { %v2481_v6 = vpop.f32.mrb[4].mxu0 }
  0xe7   :  { %v187_v8 = vpop.f32.mrb[5].mxu0  ;;  %v196_v37 = vadd.f32 %v2481_v6, %v3155_v13 }
  0xe8   :  { %v2482_v10 = vpop.f32.mrb[6].mxu0  ;;  %v188_v39 = vadd.f32 %v187_v8, %v3155_v13 }
  0xe9   :  { %v190_v12 = vpop.f32.mrb[7].mxu0  ;;  %v199_v44 = vadd.f32 %v2482_v10, %v3155_v13 }
  0xea   :  { %v191_v48 = vadd.f32 %v190_v12, %v3155_v13 }
  0xee   :  { %v2485_v15 = vpop.f32.mrb[8].mxu0 }
  0xef   :  { %v203_v17 = vpop.f32.mrb[9].mxu0  ;;  %v212_v57 = vadd.f32 %v2485_v15, %v3155_v13 }
  0xf0   :  { %v2486_v20 = vpop.f32.mrb[10].mxu0  ;;  %v204_v59 = vadd.f32 %v203_v17, %v3155_v13 }
  0xf1   :  { %v206_v23 = vpop.f32.mrb[11].mxu0  ;;  %v215_v63 = vadd.f32 %v2486_v20, %v3155_v13 }
  0xf2   :  { %v207_v2 = vadd.f32 %v206_v23, %v3155_v13 }
  0xf5   :  { %v2509_v19 = vpop.f32.mrb[0].mxu1 }
  0xf6   :  { %v409_v21 = vadd.f32 %v2509_v19, %v3160_v14  ;;  %v400_v22 = vpop.f32.mrb[1].mxu1 }
  0xf7   :  { %v401_v24 = vadd.f32 %v400_v22, %v3160_v14  ;;  %v2510_v25 = vpop.f32.mrb[2].mxu1  ;;  %v2489_v35 = vpop.f32.mrb[12].mxu0 }
  0xf8   :  { %v702_v27 = vmul.f32 %v409_v21, %v180_v16  ;;  %v412_v28 = vadd.f32 %v2510_v25, %v3160_v14  ;;  %v403_v29 = vpop.f32.mrb[3].mxu1  ;;  %v219_v38 = vpop.f32.mrb[13].mxu0  ;;  %v228_v17 = vadd.f32 %v2489_v35, %v3155_v13 }
  0xf9   :  { %v700_v31 = vmul.f32 %v401_v24, %v172_v18  ;;  %v404_v32 = vadd.f32 %v403_v29, %v3160_v14  ;;  %v2490_v42 = vpop.f32.mrb[14].mxu0  ;;  %v220_v19 = vadd.f32 %v219_v38, %v3155_v13  ;;  %v2742_v38 = vld [vmem:[%s4103_s2 + $0x38] sm:$0xff]  }
  0xfa   :  { %v703_v33 = vmul.f32 %v412_v28, %v183_v26  ;;  %v222_v46 = vpop.f32.mrb[15].mxu0  ;;  %v231_v23 = vadd.f32 %v2490_v42, %v3155_v13 }
  0xfb   :  { %v701_v34 = vmul.f32 %v404_v32, %v175_v30  ;;  %v223_v26 = vadd.f32 %v222_v46, %v3155_v13  ;;  %v2739_v13 = vld [vmem:[%s4103_s2 + $0x28] sm:$0xff]  }
  0xfc   :  { %v717_v36 = vpack.c.bf16 %v703_v33, %v702_v27  ;;  %2548 = vmatmul.mubr.bf16.gmra.mrb[24].mxu0 %v2739_v13 }
  0xfd   :  { %v2513_v40 = vpop.f32.mrb[4].mxu1  ;;  %v716_v41 = vpack.c.bf16 %v701_v34, %v700_v31 }
  0xfe   :  { %v425_v43 = vadd.f32 %v2513_v40, %v3160_v14  ;;  %v416_v45 = vpop.f32.mrb[5].mxu1 }
  0xff   :  { %v417_v47 = vadd.f32 %v416_v45, %v3160_v14  ;;  %v2514_v49 = vpop.f32.mrb[6].mxu1  ;;  %2571 = vmatprep.mubr.bf16.mxu1 %v716_v41 }
 0x100   :  { %v706_v50 = vmul.f32 %v425_v43, %v196_v37  ;;  %v428_v51 = vadd.f32 %v2514_v49, %v3160_v14  ;;  %v419_v52 = vpop.f32.mrb[7].mxu1  ;;  %2572 = vmatmul.mubr.bf16.vlgmr.msra.gmra.mrb[16].mxu1 %v717_v36  ;;  %v2741_v37 = vld [vmem:[%s4103_s2 + $0x30] sm:$0xff]  }
 0x101   :  { %v704_v53 = vmul.f32 %v417_v47, %v188_v39  ;;  %v420_v54 = vadd.f32 %v419_v52, %v3160_v14  ;;  %2551 = vmatprep.mubr.bf16.mxu0 %v2741_v37  ;;  %v497_v39 = vsub.s32 2, %v3143_v5 }
 0x102   :  { %v707_v55 = vmul.f32 %v428_v51, %v199_v44 }
 0x103   :  { %v705_v56 = vmul.f32 %v420_v54, %v191_v48  ;;  %v3210_v40 = vrot.slane %v3149_v9, %v497_v39  ;;  %v2541_v41 = vpop.f32.mrb[16].mxu0 }
 0x104   :  { %v719_v58 = vpack.c.bf16 %v707_v55, %v706_v50  ;;  %2552 = vmatmul.mubr.bf16.gmra.mrb[28].mxu0 %v2742_v38  ;;  %v629_v43 = vpop.f32.mrb[17].mxu0 }
 0x105   :  { %v2517_v60 = vpop.f32.mrb[8].mxu1  ;;  %v718_v61 = vpack.c.bf16 %v705_v56, %v704_v53  ;;  %v3213_v42 = vadd.f32 %v2541_v41, %v3210_v40  ;;  %v3216_v44 = vadd.f32 %v629_v43, %v3210_v40  ;;  %v2542_v45 = vpop.f32.mrb[18].mxu0 }
 0x106   :  { %v441_v62 = vadd.f32 %v2517_v60, %v3160_v14  ;;  %v432_v0 = vpop.f32.mrb[9].mxu1  ;;  %v3219_v46 = vadd.f32 %v2542_v45, %v3210_v40  ;;  %v632_v47 = vpop.f32.mrb[19].mxu0  ;;  %v2743_v60 = vld [vmem:[%s4106_s11] sm:$0xff]  }
 0x107   :  { %v433_v1 = vadd.f32 %v432_v0, %v3160_v14  ;;  %v2518_v3 = vpop.f32.mrb[10].mxu1  ;;  %2575 = vmatprep.mubr.bf16.mxu1 %v718_v61  ;;  %v3222_v48 = vadd.f32 %v632_v47, %v3210_v40  ;;  %2607 = vmatprep.subr.bf16.mxu1 %v2743_v60 }
 0x108   :  { %v710_v4 = vmul.f32 %v441_v62, %v212_v57  ;;  %v444_v6 = vadd.f32 %v2518_v3, %v3160_v14  ;;  %v435_v8 = vpop.f32.mrb[11].mxu1  ;;  %2576 = vmatmul.mubr.bf16.gmra.mrb[20].mxu1 %v719_v58  ;;  %v693_v9 = vpack.c.bf16 %v3219_v46, %v3213_v42 }
 0x109   :  { %v708_v10 = vmul.f32 %v433_v1, %v204_v59  ;;  %v436_v12 = vadd.f32 %v435_v8, %v3160_v14  ;;  %v692_v49 = vpack.c.bf16 %v3222_v48, %v3216_v44  ;;  %2608 = vmatpush3.bf16.msra.mxu1 %v2743_v60 }
 0x10a   :  { %v711_v15 = vmul.f32 %v444_v6, %v215_v63 }
 0x10b   :  { %v709_v16 = vmul.f32 %v436_v12, %v207_v2  ;;  %v2545_v50 = vpop.f32.mrb[20].mxu0 }
 0x10c   :  { %v721_v18 = vpack.c.bf16 %v711_v15, %v710_v4  ;;  %v3229_v51 = vadd.f32 %v2545_v50, %v3210_v40  ;;  %v645_v52 = vpop.f32.mrb[21].mxu0 }
 0x10d   :  { %v2521_v20 = vpop.f32.mrb[12].mxu1  ;;  %v720_v21 = vpack.c.bf16 %v709_v16, %v708_v10  ;;  %v3232_v53 = vadd.f32 %v645_v52, %v3210_v40  ;;  %v2546_v54 = vpop.f32.mrb[22].mxu0 }
 0x10e   :  { %v457_v22 = vadd.f32 %v2521_v20, %v3160_v14  ;;  %v448_v24 = vpop.f32.mrb[13].mxu1  ;;  %v3235_v55 = vadd.f32 %v2546_v54, %v3210_v40  ;;  %v648_v56 = vpop.f32.mrb[23].mxu0 }
 0x10f   :  { %v449_v25 = vadd.f32 %v448_v24, %v3160_v14  ;;  %v2522_v27 = vpop.f32.mrb[14].mxu1  ;;  %2579 = vmatprep.mubr.bf16.mxu1 %v720_v21  ;;  %v3238_v57 = vadd.f32 %v648_v56, %v3210_v40 }
 0x110   :  { %v714_v28 = vmul.f32 %v457_v22, %v228_v17  ;;  %v460_v29 = vadd.f32 %v2522_v27, %v3160_v14  ;;  %v451_v30 = vpop.f32.mrb[15].mxu1  ;;  %2580 = vmatmul.mubr.bf16.gmra.mrb[24].mxu1 %v721_v18  ;;  %v695_v58 = vpack.c.bf16 %v3235_v55, %v3229_v51 }
 0x111   :  { %v712_v31 = vmul.f32 %v449_v25, %v220_v19  ;;  %v452_v32 = vadd.f32 %v451_v30, %v3160_v14  ;;  %v2740_v14 = vld [vmem:[%s4104_s10 + $0x8] sm:$0xff]   ;;  %v694_v59 = vpack.c.bf16 %v3238_v57, %v3232_v53 }
 0x112   :  { %v715_v33 = vmul.f32 %v460_v29, %v231_v23  ;;  %2589 = vmatprep.subr.bf16.mxu0 %v2740_v14 }
 0x113   :  { %v713_v34 = vmul.f32 %v452_v32, %v223_v26  ;;  %2590 = vmatpush3.bf16.msra.mxu0 %v2740_v14 }
 0x114   :  { %v723_v35 = vpack.c.bf16 %v715_v33, %v714_v28 }
 0x115   :  { %v722_v36 = vpack.c.bf16 %v713_v34, %v712_v31 }
 0x117   :  { %2583 = vmatprep.mubr.bf16.mxu1 %v722_v36 }
 0x118   :  { %2584 = vmatmul.mubr.bf16.gmra.mrb[28].mxu1 %v723_v35 }
 0x1d3   :  { %v2573_v61 = vpop.f32.mrb[16].mxu1 }
 0x1d4   :  { %v822_v62 = vpop.f32.mrb[17].mxu1  ;;  %v889_v1 = vmul.f32 1.442695, %v2573_v61 }
 0x1d5   :  { %v885_v63 = vmul.f32 1.442695, %v822_v62  ;;  %v2574_v0 = vpop.f32.mrb[18].mxu1 }
 0x1d6   :  { %v891_v2 = vmul.f32 1.442695, %v2574_v0  ;;  %v825_v3 = vpop.f32.mrb[19].mxu1 }
 0x1d7   :  { %2757 = vpow2.f32 %v885_v63  ;;  %v887_v4 = vmul.f32 1.442695, %v825_v3 }
 0x1d8   :  { %2759 = vpow2.f32 %v891_v2 }
 0x1d9   :  { %2761 = vpow2.f32 %v887_v4 }
 0x1da   :  { %2763 = vpow2.f32 %v889_v1 }
 0x1db   :  { %v2577_v6 = vpop.f32.mrb[20].mxu1 }
 0x1dc   :  { %v838_v8 = vpop.f32.mrb[21].mxu1  ;;  %v897_v15 = vmul.f32 1.442695, %v2577_v6 }
 0x1dd   :  { %v893_v10 = vmul.f32 1.442695, %v838_v8  ;;  %v2578_v12 = vpop.f32.mrb[22].mxu1  ;;  %v2549_v8 = vpop.f32.mrb[24].mxu0 }
 0x1de   :  { %v899_v16 = vmul.f32 1.442695, %v2578_v12  ;;  %v841_v17 = vpop.f32.mrb[23].mxu1  ;;  %v661_v12 = vpop.f32.mrb[25].mxu0 }
 0x1df   :  { %2765 = vpow2.f32 %v893_v10  ;;  %v895_v18 = vmul.f32 1.442695, %v841_v17  ;;  %v3304_v10 = vadd.f32 %v2549_v8, %v3210_v40 }
 0x1e0   :  { %2767 = vpow2.f32 %v899_v16  ;;  %v2550_v16 = vpop.f32.mrb[26].mxu0 }
 0x1e1   :  { %v3247_v19 = vpop.eup %2757  ;;  %2769 = vpow2.f32 %v895_v18  ;;  %v3310_v17 = vadd.f32 %v2550_v16, %v3210_v40  ;;  %v664_v18 = vpop.f32.mrb[27].mxu0 }
 0x1e2   :  { %v3249_v20 = vpop.eup %2759  ;;  %2771 = vpow2.f32 %v897_v15  ;;  %v3307_v15 = vadd.f32 %v661_v12, %v3210_v40 }
 0x1e3   :  { %v3251_v21 = vpop.eup %2761  ;;  %v2581_v22 = vpop.f32.mrb[24].mxu1 }
 0x1e4   :  { %v3253_v23 = vpop.eup %2763  ;;  %v854_v24 = vpop.f32.mrb[25].mxu1  ;;  %v917_v25 = vpack.c.bf16 %v3251_v21, %v3247_v19  ;;  %v905_v29 = vmul.f32 1.442695, %v2581_v22  ;;  %v3313_v22 = vadd.f32 %v664_v18, %v3210_v40 }
 0x1e5   :  { %v918_v26 = vpack.c.bf16 %v3249_v20, %v3253_v23  ;;  %v901_v27 = vmul.f32 1.442695, %v854_v24  ;;  %v2582_v28 = vpop.f32.mrb[26].mxu1  ;;  %v697_v24 = vpack.c.bf16 %v3310_v17, %v3304_v10 }
 0x1e6   :  { %v907_v30 = vmul.f32 1.442695, %v2582_v28  ;;  %v857_v31 = vpop.f32.mrb[27].mxu1  ;;  %2591 = vmatprep.mubr.msk.bf16.mxu0 %vm112_vm0, %v917_v25  ;;  %v696_v25 = vpack.c.bf16 %v3313_v22, %v3307_v15  ;;  %v3413_v15 = vld [vmem:[%s4108_s8] sm:$0xff] }
 0x1e7   :  { %2773 = vpow2.f32 %v901_v27  ;;  %v903_v32 = vmul.f32 1.442695, %v857_v31  ;;  %2592 = vmatmul.mubr.msk.bf16.vlgmr.msra.gmra.mrb[32].mxu0 %vm112_vm0, %v918_v26  ;;  %v2553_v26 = vpop.f32.mrb[28].mxu0  ;;  %v3418_v17 = vrot.slane %v3413_v15, %v98_v7  ;;  %v2886_v7 = vld [vmem:[%s4099_s0] sm:$0xff] }
 0x1e8   :  { %2775 = vpow2.f32 %v907_v30  ;;  %v3320_v27 = vadd.f32 %v2553_v26, %v3210_v40  ;;  %v677_v28 = vpop.f32.mrb[29].mxu0 }
 0x1e9   :  { %v3261_v33 = vpop.eup %2765  ;;  %2777 = vpow2.f32 %v903_v32  ;;  %v2554_v30 = vpop.f32.mrb[30].mxu0 }
 0x1ea   :  { %v3263_v34 = vpop.eup %2767  ;;  %2779 = vpow2.f32 %v905_v29  ;;  %v3323_v29 = vadd.f32 %v677_v28, %v3210_v40  ;;  %v3326_v31 = vadd.f32 %v2554_v30, %v3210_v40  ;;  %v680_v32 = vpop.f32.mrb[31].mxu0 }
 0x1eb   :  { %v3265_v35 = vpop.eup %2769  ;;  %v2585_v36 = vpop.f32.mrb[28].mxu1 }
 0x1ec   :  { %v3267_v13 = vpop.eup %2771  ;;  %v870_v37 = vpop.f32.mrb[29].mxu1  ;;  %v919_v38 = vpack.c.bf16 %v3265_v35, %v3261_v33  ;;  %v913_v45 = vmul.f32 1.442695, %v2585_v36  ;;  %v3329_v36 = vadd.f32 %v680_v32, %v3210_v40  ;;  %v2746_v40 = vld [vmem:[%s4107_s6 + $0x8] sm:$0xff]  }
 0x1ed   :  { %v909_v14 = vmul.f32 1.442695, %v870_v37  ;;  %v2586_v41 = vpop.f32.mrb[30].mxu1  ;;  %v920_v43 = vpack.c.bf16 %v3263_v34, %v3267_v13  ;;  %v699_v37 = vpack.c.bf16 %v3326_v31, %v3320_v27 }
 0x1ee   :  { %v915_v47 = vmul.f32 1.442695, %v2586_v41  ;;  %v873_v50 = vpop.f32.mrb[31].mxu1  ;;  %2595 = vmatprep.mubr.msk.bf16.mxu0 %vm112_vm0, %v919_v38  ;;  %v698_v38 = vpack.c.bf16 %v3329_v36, %v3323_v29  ;;  %v2745_v41 = vld [vmem:[%s4107_s6] sm:$0xff]  }
 0x1ef   :  { %2781 = vpow2.f32 %v909_v14  ;;  %v911_v52 = vmul.f32 1.442695, %v873_v50  ;;  %2596 = vmatmul.mubr.msk.bf16.gmra.mrb[36].mxu0 %vm112_vm0, %v920_v43  ;;  %v2744_v14 = vld [vmem:[%s4106_s11 + $0x8] sm:$0xff]   ;;  %2627 = vmatprep.subr.bf16.mxu0 %v2745_v41  ;;  %v2747_v43 = vld [vmem:[%s4107_s6 + $0x10] sm:$0xff]  }
 0x1f0   :  { %2783 = vpow2.f32 %v915_v47  ;;  %2609 = vmatprep.subr.bf16.mxu1 %v2744_v14  ;;  %2628 = vmatpush3.bf16.msra.mxu0 %v2745_v41  ;;  %v2749_v47 = vld [vmem:[%s4107_s6 + $0x20] sm:$0xff]   ;;  %v2750_v50 = vld [vmem:[%s4107_s6 + $0x28] sm:$0xff]  }
 0x1f1   :  { %v3275_v54 = vpop.eup %2773  ;;  %2785 = vpow2.f32 %v911_v52  ;;  %2610 = vmatpush3.bf16.msra.mxu1 %v2744_v14  ;;  %2629 = vmatprep.subr.bf16.mxu0 %v2746_v40 }
 0x1f2   :  { %v3277_v56 = vpop.eup %2775  ;;  %2787 = vpow2.f32 %v913_v45  ;;  %v2748_v45 = vld [vmem:[%s4107_s6 + $0x18] sm:$0xff]  }
 0x1f3   :  { %v3279_v60 = vpop.eup %2777 }
 0x1f4   :  { %v3281_v61 = vpop.eup %2779  ;;  %v921_v62 = vpack.c.bf16 %v3279_v60, %v3275_v54  ;;  %2630 = vmatpush3.bf16.msra.mxu0 %v2746_v40 }
 0x1f5   :  { %v922_v63 = vpack.c.bf16 %v3277_v56, %v3281_v61  ;;  %2631 = vmatprep.subr.bf16.mxu0 %v2747_v43 }
 0x1f6   :  { %2599 = vmatprep.mubr.msk.bf16.mxu0 %vm112_vm0, %v921_v62 }
 0x1f7   :  { %2600 = vmatmul.mubr.msk.bf16.gmra.mrb[40].mxu0 %vm112_vm0, %v922_v63 }
 0x1f8   :  { %2632 = vmatpush3.bf16.msra.mxu0 %v2747_v43 }
 0x1f9   :  { %v3289_v0 = vpop.eup %2781  ;;  %2633 = vmatprep.subr.bf16.mxu0 %v2748_v45 }
 0x1fa   :  { %v3291_v1 = vpop.eup %2783 }
 0x1fb   :  { %v3293_v2 = vpop.eup %2785 }
 0x1fc   :  { %v3295_v3 = vpop.eup %2787  ;;  %v923_v4 = vpack.c.bf16 %v3293_v2, %v3289_v0  ;;  %2634 = vmatpush3.bf16.msra.mxu0 %v2748_v45 }
 0x1fd   :  { %v924_v6 = vpack.c.bf16 %v3291_v1, %v3295_v3  ;;  %2635 = vmatprep.subr.bf16.mxu0 %v2749_v47 }
 0x1fe   :  { %2603 = vmatprep.mubr.msk.bf16.mxu0 %vm112_vm0, %v923_v4 }
 0x1ff   :  { %2604 = vmatmul.mubr.msk.bf16.gmra.mrb[44].mxu0 %vm112_vm0, %v924_v6 }
 0x200   :  { %2636 = vmatpush3.bf16.msra.mxu0 %v2749_v47 }
 0x201   :  { %2637 = vmatprep.subr.bf16.mxu0 %v2750_v50 }
 0x204   :  { %2638 = vmatpush3.bf16.msra.mxu0 %v2750_v50 }
 0x2ba   :  { %v2593_v52 = vpop.f32.mrb[32].mxu0 }
 0x2bb   :  { %2789 = vrcp.f32 %v2593_v52  ;;  %v999_v62 = vpop.f32.mrb[33].mxu0 }
 0x2bc   :  { %2791 = vrcp.f32 %v999_v62  ;;  %v2594_v63 = vpop.f32.mrb[34].mxu0 }
 0x2bd   :  { %2793 = vrcp.f32 %v2594_v63  ;;  %v1002_v4 = vpop.f32.mrb[35].mxu0 }
 0x2be   :  { %2795 = vrcp.f32 %v1002_v4 }
 0x2c2   :  { %v2597_v6 = vpop.f32.mrb[36].mxu0 }
 0x2c3   :  { %2797 = vrcp.f32 %v2597_v6  ;;  %v1015_v8 = vpop.f32.mrb[37].mxu0 }
 0x2c4   :  { %2799 = vrcp.f32 %v1015_v8  ;;  %v2598_v12 = vpop.f32.mrb[38].mxu0 }
 0x2c5   :  { %v2790_v16 = vpop.eup %2789  ;;  %2801 = vrcp.f32 %v2598_v12  ;;  %v1018_v18 = vpop.f32.mrb[39].mxu0 }
 0x2c6   :  { %v2792_v26 = vpop.eup %2791  ;;  %2803 = vrcp.f32 %v1018_v18  ;;  %v1080_v32 = vmul.f32 %v2790_v16, %v3253_v23 }
 0x2c7   :  { %v2794_v28 = vpop.eup %2793  ;;  %v1078_v41 = vmul.f32 %v2792_v26, %v3247_v19 }
 0x2c8   :  { %v2796_v30 = vpop.eup %2795  ;;  %v1081_v14 = vmul.f32 %v2794_v28, %v3249_v20 }
 0x2c9   :  { %v1079_v40 = vmul.f32 %v2796_v30, %v3251_v21 }
 0x2ca   :  { %v1095_v43 = vpack.c.bf16 %v1081_v14, %v1080_v32  ;;  %v2601_v45 = vpop.f32.mrb[40].mxu0 }
 0x2cb   :  { %2805 = vrcp.f32 %v2601_v45  ;;  %v1031_v47 = vpop.f32.mrb[41].mxu0  ;;  %v1094_v50 = vpack.c.bf16 %v1079_v40, %v1078_v41 }
 0x2cc   :  { %2807 = vrcp.f32 %v1031_v47  ;;  %v2602_v52 = vpop.f32.mrb[42].mxu0 }
 0x2cd   :  { %v2798_v62 = vpop.eup %2797  ;;  %2809 = vrcp.f32 %v2602_v52  ;;  %v1034_v63 = vpop.f32.mrb[43].mxu0  ;;  %2611 = vmatprep.mubr.msk.bf16.mxu1 %vm112_vm0, %v1094_v50 }
 0x2ce   :  { %v2800_v4 = vpop.eup %2799  ;;  %2811 = vrcp.f32 %v1034_v63  ;;  %2612 = vmatmul.mubr.msk.bf16.vlgmr.msra.gmra.mrb[32].mxu1 %vm112_vm0, %v1095_v43  ;;  %v1084_v21 = vmul.f32 %v2798_v62, %v3267_v13 }
 0x2cf   :  { %v2802_v20 = vpop.eup %2801  ;;  %v1082_v6 = vmul.f32 %v2800_v4, %v3261_v33 }
 0x2d0   :  { %v2804_v19 = vpop.eup %2803  ;;  %v1085_v23 = vmul.f32 %v2802_v20, %v3263_v34  ;;  %v2751_v20 = vld [vmem:[%s4107_s6 + $0x30] sm:$0xff]  }
 0x2d1   :  { %v1083_v8 = vmul.f32 %v2804_v19, %v3265_v35  ;;  %2639 = vmatprep.subr.bf16.mxu0 %v2751_v20 }
 0x2d2   :  { %v2605_v12 = vpop.f32.mrb[44].mxu0  ;;  %v1097_v16 = vpack.c.bf16 %v1085_v23, %v1084_v21  ;;  %2640 = vmatpush3.bf16.msra.mxu0 %v2751_v20 }
 0x2d3   :  { %2813 = vrcp.f32 %v2605_v12  ;;  %v1047_v18 = vpop.f32.mrb[45].mxu0  ;;  %v1096_v26 = vpack.c.bf16 %v1083_v8, %v1082_v6 }
 0x2d4   :  { %2815 = vrcp.f32 %v1047_v18  ;;  %v2606_v28 = vpop.f32.mrb[46].mxu0 }
 0x2d5   :  { %v2806_v30 = vpop.eup %2805  ;;  %2817 = vrcp.f32 %v2606_v28  ;;  %v1050_v32 = vpop.f32.mrb[47].mxu0  ;;  %2615 = vmatprep.mubr.msk.bf16.mxu1 %vm112_vm0, %v1096_v26 }
 0x2d6   :  { %v2808_v14 = vpop.eup %2807  ;;  %2819 = vrcp.f32 %v1050_v32  ;;  %2616 = vmatmul.mubr.msk.bf16.gmra.mrb[36].mxu1 %vm112_vm0, %v1097_v16  ;;  %v1088_v35 = vmul.f32 %v2806_v30, %v3281_v61 }
 0x2d7   :  { %v2810_v34 = vpop.eup %2809  ;;  %v1086_v41 = vmul.f32 %v2808_v14, %v3275_v54 }
 0x2d8   :  { %v2812_v33 = vpop.eup %2811  ;;  %v1089_v13 = vmul.f32 %v2810_v34, %v3277_v56 }
 0x2d9   :  { %v1087_v40 = vmul.f32 %v2812_v33, %v3279_v60 }
 0x2da   :  { %v1099_v43 = vpack.c.bf16 %v1089_v13, %v1088_v35 }
 0x2db   :  { %v1098_v45 = vpack.c.bf16 %v1087_v40, %v1086_v41 }
 0x2dd   :  { %v2814_v47 = vpop.eup %2813  ;;  %2619 = vmatprep.mubr.msk.bf16.mxu1 %vm112_vm0, %v1098_v45 }
 0x2de   :  { %v2816_v50 = vpop.eup %2815  ;;  %2620 = vmatmul.mubr.msk.bf16.gmra.mrb[40].mxu1 %vm112_vm0, %v1099_v43  ;;  %v1092_v63 = vmul.f32 %v2814_v47, %v3295_v3  ;;  %v2887_v43 = vld [vmem:[%s4099_s0 + $0x18] sm:$0xff] }
 0x2df   :  { %v2818_v52 = vpop.eup %2817  ;;  %v1090_v56 = vmul.f32 %v2816_v50, %v3289_v0  ;;  %v2888_v50 = vld [vmem:[%s4099_s0 + $0x8] sm:$0xff] }
 0x2e0   :  { %v2820_v62 = vpop.eup %2819  ;;  %v1093_v61 = vmul.f32 %v2818_v52, %v3291_v1  ;;  %v2752_v1 = vld [vmem:[%s4107_s6 + $0x38] sm:$0xff]  }
 0x2e1   :  { %v1091_v54 = vmul.f32 %v2820_v62, %v3293_v2  ;;  %2641 = vmatprep.subr.bf16.mxu0 %v2752_v1 }
 0x2e2   :  { %v1101_v4 = vpack.c.bf16 %v1093_v61, %v1092_v63  ;;  %2642 = vmatpush3.bf16.msra.mxu0 %v2752_v1 }
 0x2e3   :  { %v1100_v60 = vpack.c.bf16 %v1091_v54, %v1090_v56 }
 0x2e5   :  { %2623 = vmatprep.mubr.msk.bf16.mxu1 %vm112_vm0, %v1100_v60 }
 0x2e6   :  { %2624 = vmatmul.mubr.msk.bf16.gmra.mrb[44].mxu1 %vm112_vm0, %v1101_v4 }
 0x3a1   :  { %v2613_v0 = vpop.f32.mrb[32].mxu1 }
 0x3a2   :  { %v1176_v2 = vpop.f32.mrb[33].mxu1 }
 0x3a3   :  { %v2614_v3 = vpop.f32.mrb[34].mxu1 }
 0x3a4   :  { %v1240_v19 = vpack.c.bf16 %v2614_v3, %v2613_v0  ;;  %v1179_v21 = vpop.f32.mrb[35].mxu1 }
 0x3a5   :  { %v1239_v23 = vpack.c.bf16 %v1179_v21, %v1176_v2  ;;  %v2889_v2 = vld [vmem:[%s4099_s0 + $0x20] sm:$0xff]  ;;  %v2890_v21 = vld [vmem:[%s4099_s0 + $0x28] sm:$0xff] }
 0x3a6   :  { %v1248_v6 = vmul.bf16 %v1240_v19, %v693_v9 }
 0x3a7   :  { %v1247_v8 = vmul.bf16 %v1239_v23, %v692_v49 }
 0x3a9   :  { %v2617_v12 = vpop.f32.mrb[36].mxu1  ;;  %2643 = vmatprep.mubr.bf16.mxu0 %v1247_v8 }
 0x3aa   :  { %v1192_v16 = vpop.f32.mrb[37].mxu1  ;;  %2644 = vmatmul.mubr.bf16.vlgmr.msra.gmra.mrb[48].mxu0 %v1248_v6  ;;  %v2891_v6 = vld [vmem:[%s4099_s0 + $0x30] sm:$0xff] }
 0x3ab   :  { %v2618_v18 = vpop.f32.mrb[38].mxu1 }
 0x3ac   :  { %v1242_v26 = vpack.c.bf16 %v2618_v18, %v2617_v12  ;;  %v1195_v28 = vpop.f32.mrb[39].mxu1  ;;  %v2892_v18 = vld [vmem:[%s4099_s0 + $0x38] sm:$0xff] }
 0x3ad   :  { %v1241_v30 = vpack.c.bf16 %v1195_v28, %v1192_v16 }
 0x3ae   :  { %v1250_v32 = vmul.bf16 %v1242_v26, %v695_v58 }
 0x3af   :  { %v1249_v42 = vmul.bf16 %v1241_v30, %v694_v59 }
 0x3b1   :  { %v2621_v46 = vpop.f32.mrb[40].mxu1  ;;  %2647 = vmatprep.mubr.bf16.mxu0 %v1249_v42 }
 0x3b2   :  { %v1208_v44 = vpop.f32.mrb[41].mxu1  ;;  %2648 = vmatmul.mubr.bf16.gmra.mrb[52].mxu0 %v1250_v32 }
 0x3b3   :  { %v2622_v48 = vpop.f32.mrb[42].mxu1 }
 0x3b4   :  { %v1244_v9 = vpack.c.bf16 %v2622_v48, %v2621_v46  ;;  %v1211_v49 = vpop.f32.mrb[43].mxu1 }
 0x3b5   :  { %v1243_v14 = vpack.c.bf16 %v1211_v49, %v1208_v44 }
 0x3b6   :  { %v1252_v34 = vmul.bf16 %v1244_v9, %v697_v24 }
 0x3b7   :  { %v1251_v51 = vmul.bf16 %v1243_v14, %v696_v25  ;;  %v2893_v14 = vld [vmem:[%s4099_s0 + $0x40] sm:$0xff] }
 0x3b9   :  { %v2625_v55 = vpop.f32.mrb[44].mxu1  ;;  %2651 = vmatprep.mubr.bf16.mxu0 %v1251_v51 }
 0x3ba   :  { %v1224_v53 = vpop.f32.mrb[45].mxu1  ;;  %2652 = vmatmul.mubr.bf16.gmra.mrb[56].mxu0 %v1252_v34 }
 0x3bb   :  { %v2626_v57 = vpop.f32.mrb[46].mxu1 }
 0x3bc   :  { %v1246_v58 = vpack.c.bf16 %v2626_v57, %v2625_v55  ;;  %v1227_v59 = vpop.f32.mrb[47].mxu1  ;;  %v2894_v55 = vld [vmem:[%s4099_s0 + $0x48] sm:$0xff]  ;;  %v2895_v57 = vld [vmem:[%s4099_s0 + $0x50] sm:$0xff] }
 0x3bd   :  { %v1245_v33 = vpack.c.bf16 %v1227_v59, %v1224_v53 }
 0x3be   :  { %v1254_v35 = vmul.bf16 %v1246_v58, %v699_v37  ;;  %v2885_v37 = vld [vmem:[%s4099_s0 + $0x10] sm:$0xff] }
 0x3bf   :  { %v1253_v10 = vmul.bf16 %v1245_v33, %v698_v38 }
 0x3c1   :  { %2655 = vmatprep.mubr.bf16.mxu0 %v1253_v10 }
 0x3c2   :  { %2656 = vmatmul.mubr.bf16.gmra.mrb[60].mxu0 %v1254_v35  ;;  %v2896_v35 = vld [vmem:[%s4099_s0 + $0x58] sm:$0xff] }
 0x47d   :  { %v2645_v22 = vpop.f32.mrb[48].mxu0 }
 0x47e   :  { %v1350_v24 = vadd.f32 %v2645_v22, %v3418_v17  ;;  %v1341_v25 = vpop.f32.mrb[49].mxu0 }
 0x47f   :  { %v1342_v27 = vadd.f32 %v1341_v25, %v3418_v17  ;;  %v2646_v29 = vpop.f32.mrb[50].mxu0 }
 0x480   :  { %v1353_v31 = vadd.f32 %v2646_v29, %v3418_v17  ;;  %v1344_v36 = vpop.f32.mrb[51].mxu0  ;;  %v3426_v38 = vadd.f32 %v2885_v37, %v1350_v24 }
 0x481   :  { %v1345_v13 = vadd.f32 %v1344_v36, %v3418_v17  ;;  %v3432_v41 = vadd.f32 %v2886_v7, %v1342_v27  ;;  %v2897_v7 = vld [vmem:[%s4099_s0 + $0x60] sm:$0xff] }
 0x482   :  { %v1426_v40 = vsel %vm112_vm0, %v3426_v38, 0.0  ;;  %v3439_v45 = vadd.f32 %v2887_v43, %v1353_v31 }
 0x483   :  { %1427 = vadd.xlane.f32.xlu1 %v1426_v40  ;;  %v1420_v47 = vsel %vm112_vm0, %v3432_v41, 0.0  ;;  %v3446_v52 = vadd.f32 %v2888_v50, %v1345_v13 }
 0x484   :  { %1421 = vadd.xlane.f32.xlu0 %v1420_v47  ;;  %v1429_v61 = vsel %vm112_vm0, %v3439_v45, 0.0  ;;  %v2898_v47 = vld [vmem:[%s4099_s0 + $0x68] sm:$0xff] }
 0x485   :  { %v2649_v62 = vpop.f32.mrb[52].mxu0  ;;  %v1423_v60 = vsel %vm112_vm0, %v3446_v52, 0.0 }
 0x486   :  { %v1357_v63 = vpop.f32.mrb[53].mxu0  ;;  %v1366_v56 = vadd.f32 %v2649_v62, %v3418_v17 }
 0x487   :  { %v1358_v54 = vadd.f32 %v1357_v63, %v3418_v17  ;;  %1430 = vadd.xlane.f32.xlu1 %v1429_v61  ;;  %v2650_v4 = vpop.f32.mrb[54].mxu0  ;;  %v2900_v61 = vld [vmem:[%s4099_s0 + $0x78] sm:$0xff] }
 0x488   :  { %v1360_v20 = vpop.f32.mrb[55].mxu0  ;;  %1424 = vadd.xlane.f32.xlu0 %v1423_v60  ;;  %v1369_v1 = vadd.f32 %v2650_v4, %v3418_v17  ;;  %v3471_v8 = vadd.f32 %v2891_v6, %v1366_v56  ;;  %v2753_v60 = vld [vmem:[%s4107_s6 + $0x40] sm:$0xff]  }
 0x489   :  { %v1361_v0 = vadd.f32 %v1360_v20, %v3418_v17  ;;  %v3459_v3 = vadd.f32 %v2889_v2, %v1358_v54  ;;  %2659 = vmatprep.subr.bf16.mxu1 %v2753_v60 }
 0x48a   :  { %v3478_v26 = vadd.f32 %v2892_v18, %v1369_v1  ;;  %v1438_v46 = vsel %vm112_vm0, %v3471_v8, 0.0  ;;  %2660 = vmatpush3.bf16.msra.mxu1 %v2753_v60 }
 0x48b   :  { %v1432_v19 = vsel %vm112_vm0, %v3459_v3, 0.0  ;;  %v3466_v23 = vadd.f32 %v2890_v21, %v1361_v0 }
 0x48c   :  { %1433 = vadd.xlane.f32.xlu0 %v1432_v19  ;;  %v1441_v49 = vsel %vm112_vm0, %v3478_v26, 0.0 }
 0x48d   :  { %v2653_v12 = vpop.f32.mrb[56].mxu0  ;;  %v1435_v16 = vsel %vm112_vm0, %v3466_v23, 0.0 }
 0x48e   :  { %v1373_v28 = vpop.f32.mrb[57].mxu0  ;;  %1436 = vadd.xlane.f32.xlu1 %v1435_v16  ;;  %v1382_v30 = vadd.f32 %v2653_v12, %v3418_v17 }
 0x48f   :  { %v1374_v32 = vadd.f32 %v1373_v28, %v3418_v17  ;;  %v2654_v42 = vpop.f32.mrb[58].mxu0 }
 0x490   :  { %v1376_v44 = vpop.f32.mrb[59].mxu0  ;;  %1439 = vadd.xlane.f32.xlu0 %v1438_v46  ;;  %v1385_v48 = vadd.f32 %v2654_v42, %v3418_v17  ;;  %v3503_v58 = vadd.f32 %v2895_v57, %v1382_v30 }
 0x491   :  { %v1377_v9 = vadd.f32 %v1376_v44, %v3418_v17  ;;  %v3491_v34 = vadd.f32 %v2893_v14, %v1374_v32 }
 0x492   :  { %1442 = vadd.xlane.f32.xlu1 %v1441_v49  ;;  %v3510_v10 = vadd.f32 %v2896_v35, %v1385_v48  ;;  %v1450_v29 = vsel %vm112_vm0, %v3503_v58, 0.0 }
 0x493   :  { %v1444_v51 = vsel %vm112_vm0, %v3491_v34, 0.0  ;;  %v3498_v53 = vadd.f32 %v2894_v55, %v1377_v9 }
 0x494   :  { %1445 = vadd.xlane.f32.xlu0 %v1444_v51  ;;  %v1453_v13 = vsel %vm112_vm0, %v3510_v10, 0.0 }
 0x495   :  { %v2657_v59 = vpop.f32.mrb[60].mxu0  ;;  %v1447_v33 = vsel %vm112_vm0, %v3498_v53, 0.0 }
 0x496   :  { %1448 = vadd.xlane.f32.xlu1 %v1447_v33  ;;  %v1389_v22 = vpop.f32.mrb[61].mxu0  ;;  %v1398_v24 = vadd.f32 %v2657_v59, %v3418_v17 }
 0x497   :  { %v1390_v25 = vadd.f32 %v1389_v22, %v3418_v17  ;;  %v2658_v27 = vpop.f32.mrb[62].mxu0 }
 0x498   :  { %1451 = vadd.xlane.f32.xlu0 %v1450_v29  ;;  %v1392_v31 = vpop.f32.mrb[63].mxu0  ;;  %v1401_v36 = vadd.f32 %v2658_v27, %v3418_v17 }
 0x499   :  { %v1393_v37 = vadd.f32 %v1392_v31, %v3418_v17  ;;  %v3523_v40 = vadd.f32 %v2897_v7, %v1390_v25  ;;  %v2899_v17 = vld [vmem:[%s4099_s0 + $0x70] sm:$0xff] }
 0x49a   :  { %1454 = vadd.xlane.f32.xlu1 %v1453_v13  ;;  %v3535_v62 = vadd.f32 %v2899_v17, %v1398_v24  ;;  %v3542_v56 = vadd.f32 %v2900_v61, %v1401_v36 }
 0x49b   :  { %v1456_v43 = vsel %vm112_vm0, %v3523_v40, 0.0  ;;  %v3530_v50 = vadd.f32 %v2898_v47, %v1393_v37 }
 0x49c   :  { %1457 = vadd.xlane.f32.xlu0 %v1456_v43  ;;  %v1462_v54 = vsel %vm112_vm0, %v3535_v62, 0.0  ;;  %v1465_v4 = vsel %vm112_vm0, %v3542_v56, 0.0 }
 0x49d   :  { %v1459_v63 = vsel %vm112_vm0, %v3530_v50, 0.0 }
 0x49e   :  { %1460 = vadd.xlane.f32.xlu1 %v1459_v63 }
 0x4a0   :  { %1463 = vadd.xlane.f32.xlu0 %v1462_v54 }
 0x4a2   :  { %1466 = vadd.xlane.f32.xlu1 %v1465_v4 }
 0x510   :  { %v1428_v20 = vpop.xlane.xlu1 %1427 }
 0x511   :  { %v1471_v1 = vmul.f32 0.03125, %v1428_v20  ;;  %v1422_v0 = vpop.xlane.xlu0 %1421 }
 0x512   :  { %v1469_v2 = vmul.f32 0.03125, %v1422_v0 }
 0x513   :  { %v3552_v19 = vsub.f32 %v3426_v38, %v1471_v1 }
 0x514   :  { %v3555_v21 = vsub.f32 %v3432_v41, %v1469_v2  ;;  %v1431_v6 = vpop.xlane.xlu1 %1430 }
 0x515   :  { %v1472_v12 = vmul.f32 0.03125, %v1431_v6  ;;  %v1425_v16 = vpop.xlane.xlu0 %1424  ;;  %v1503_v38 = vmul.f32 %v3552_v19, %v3552_v19 }
 0x516   :  { %v1470_v18 = vmul.f32 0.03125, %v1425_v16  ;;  %v1501_v28 = vmul.f32 %v3555_v21, %v3555_v21 }
 0x517   :  { %v3560_v30 = vsub.f32 %v3439_v45, %v1472_v12  ;;  %v1523_v14 = vsel %vm112_vm0, %v1503_v38, 0.0 }
 0x518   :  { %v3563_v32 = vsub.f32 %v3446_v52, %v1470_v18  ;;  %v1517_v42 = vsel %vm112_vm0, %v1501_v28, 0.0 }
 0x519   :  { %v1434_v41 = vpop.xlane.xlu0 %1433  ;;  %1518 = vadd.xlane.f32.xlu0 %v1517_v42  ;;  %v1504_v9 = vmul.f32 %v3560_v30, %v3560_v30 }
 0x51a   :  { %v1473_v46 = vmul.f32 0.03125, %v1434_v41  ;;  %v1502_v44 = vmul.f32 %v3563_v32, %v3563_v32 }
 0x51b   :  { %v1437_v48 = vpop.xlane.xlu1 %1436  ;;  %v1526_v35 = vsel %vm112_vm0, %v1504_v9, 0.0 }
 0x51c   :  { %v3573_v45 = vsub.f32 %v3459_v3, %v1473_v46  ;;  %v1474_v52 = vmul.f32 0.03125, %v1437_v48  ;;  %v1520_v49 = vsel %vm112_vm0, %v1502_v44, 0.0 }
 0x51d   :  { %v1440_v51 = vpop.xlane.xlu0 %1439  ;;  %1521 = vadd.xlane.f32.xlu1 %v1520_v49  ;;  %1524 = vadd.xlane.f32.xlu0 %v1523_v14 }
 0x51e   :  { %v3578_v55 = vsub.f32 %v3466_v23, %v1474_v52  ;;  %v1475_v57 = vmul.f32 0.03125, %v1440_v51  ;;  %v1505_v59 = vmul.f32 %v3573_v45, %v3573_v45 }
 0x51f   :  { %v1443_v33 = vpop.xlane.xlu1 %1442 }
 0x520   :  { %v3584_v3 = vsub.f32 %v3471_v8, %v1475_v57  ;;  %v1476_v22 = vmul.f32 0.03125, %v1443_v33  ;;  %v1529_v24 = vsel %vm112_vm0, %v1505_v59, 0.0  ;;  %v1506_v25 = vmul.f32 %v3578_v55, %v3578_v55  ;;  %v2755_v59 = vld [vmem:[%s4107_s6 + $0x50] sm:$0xff]   ;;  %v2756_v33 = vld [vmem:[%s4107_s6 + $0x58] sm:$0xff]  }
 0x521   :  { %v1446_v27 = vpop.xlane.xlu0 %1445  ;;  %1527 = vadd.xlane.f32.xlu1 %v1526_v35  ;;  %1530 = vadd.xlane.f32.xlu0 %v1529_v24 }
 0x522   :  { %v3590_v23 = vsub.f32 %v3478_v26, %v1476_v22  ;;  %v1477_v29 = vmul.f32 0.03125, %v1446_v27  ;;  %v1507_v31 = vmul.f32 %v3584_v3, %v3584_v3  ;;  %v1532_v8 = vsel %vm112_vm0, %v1506_v25, 0.0  ;;  %2679 = vmatprep.subr.bf16.mxu0 %v2755_v59 }
 0x523   :  { %v1449_v36 = vpop.xlane.xlu1 %1448  ;;  %2680 = vmatpush3.bf16.msra.mxu0 %v2755_v59 }
 0x524   :  { %v3596_v37 = vsub.f32 %v3491_v34, %v1477_v29  ;;  %v1478_v13 = vmul.f32 0.03125, %v1449_v36  ;;  %v1535_v7 = vsel %vm112_vm0, %v1507_v31, 0.0  ;;  %v1508_v43 = vmul.f32 %v3590_v23, %v3590_v23  ;;  %2681 = vmatprep.subr.bf16.mxu0 %v2756_v33 }
 0x525   :  { %v1452_v47 = vpop.xlane.xlu0 %1451  ;;  %1533 = vadd.xlane.f32.xlu1 %v1532_v8  ;;  %1536 = vadd.xlane.f32.xlu0 %v1535_v7 }
 0x526   :  { %v3602_v26 = vsub.f32 %v3498_v53, %v1478_v13  ;;  %v1479_v17 = vmul.f32 0.03125, %v1452_v47  ;;  %v1509_v63 = vmul.f32 %v3596_v37, %v3596_v37  ;;  %v1538_v34 = vsel %vm112_vm0, %v1508_v43, 0.0 }
 0x527   :  { %v1455_v61 = vpop.xlane.xlu1 %1454  ;;  %2682 = vmatpush3.bf16.msra.mxu0 %v2756_v33 }
 0x528   :  { %v3608_v54 = vsub.f32 %v3503_v58, %v1479_v17  ;;  %v1480_v4 = vmul.f32 0.03125, %v1455_v61  ;;  %v1541_v60 = vsel %vm112_vm0, %v1509_v63, 0.0  ;;  %v1510_v20 = vmul.f32 %v3602_v26, %v3602_v26 }
 0x529   :  { %1539 = vadd.xlane.f32.xlu1 %v1538_v34  ;;  %1542 = vadd.xlane.f32.xlu0 %v1541_v60  ;;  %v1458_v53 = vpop.xlane.xlu0 %1457  ;;  %v1631_v61 = vsub.s32 3, %v3143_v5 }
 0x52a   :  { %v3614_v1 = vsub.f32 %v3510_v10, %v1480_v4  ;;  %v1481_v0 = vmul.f32 0.03125, %v1458_v53  ;;  %v1511_v2 = vmul.f32 %v3608_v54, %v3608_v54  ;;  %v1544_v58 = vsel %vm112_vm0, %v1510_v20, 0.0 }
 0x52b   :  { %v1461_v6 = vpop.xlane.xlu1 %1460 }
 0x52c   :  { %v3620_v12 = vsub.f32 %v3523_v40, %v1481_v0  ;;  %v1482_v16 = vmul.f32 0.03125, %v1461_v6  ;;  %v1547_v18 = vsel %vm112_vm0, %v1511_v2, 0.0  ;;  %v1512_v28 = vmul.f32 %v3614_v1, %v3614_v1 }
 0x52d   :  { %1545 = vadd.xlane.f32.xlu1 %v1544_v58  ;;  %1548 = vadd.xlane.f32.xlu0 %v1547_v18  ;;  %v1464_v10 = vpop.xlane.xlu0 %1463  ;;  %v3659_v58 = vrot.slane %v3413_v15, %v1631_v61 }
 0x52e   :  { %v3626_v42 = vsub.f32 %v3530_v50, %v1482_v16  ;;  %v1483_v38 = vmul.f32 0.03125, %v1464_v10  ;;  %v1513_v41 = vmul.f32 %v3620_v12, %v3620_v12  ;;  %v1550_v40 = vsel %vm112_vm0, %v1512_v28, 0.0 }
 0x52f   :  { %v1467_v46 = vpop.xlane.xlu1 %1466  ;;  %v1651_v16 = vsub.s32 4, %v3143_v5 }
 0x530   :  { %v3632_v44 = vsub.f32 %v3535_v62, %v1483_v38  ;;  %v1484_v48 = vmul.f32 0.03125, %v1467_v46  ;;  %v1553_v9 = vsel %vm112_vm0, %v1513_v41, 0.0  ;;  %v1514_v52 = vmul.f32 %v3626_v42, %v3626_v42 }
 0x531   :  { %1551 = vadd.xlane.f32.xlu1 %v1550_v40  ;;  %1554 = vadd.xlane.f32.xlu0 %v1553_v9 }
 0x532   :  { %v3638_v50 = vsub.f32 %v3542_v56, %v1484_v48  ;;  %v1515_v49 = vmul.f32 %v3632_v44, %v3632_v44  ;;  %v1556_v14 = vsel %vm112_vm0, %v1514_v52, 0.0  ;;  %v2754_v56 = vld [vmem:[%s4107_s6 + $0x48] sm:$0xff]   ;;  %v3664_v52 = vrot.slane %v3413_v15, %v1651_v16 }
 0x533   :  { %2661 = vmatprep.subr.bf16.mxu1 %v2754_v56 }
 0x534   :  { %v1559_v51 = vsel %vm112_vm0, %v1515_v49, 0.0  ;;  %v1516_v62 = vmul.f32 %v3638_v50, %v3638_v50  ;;  %2662 = vmatpush3.bf16.msra.mxu1 %v2754_v56 }
 0x535   :  { %1557 = vadd.xlane.f32.xlu1 %v1556_v14  ;;  %1560 = vadd.xlane.f32.xlu0 %v1559_v51 }
 0x536   :  { %v1562_v57 = vsel %vm112_vm0, %v1516_v62, 0.0 }
 0x539   :  { %1563 = vadd.xlane.f32.xlu1 %v1562_v57 }
 0x5a6   :  { %v1519_v35 = vpop.xlane.xlu0 %1518 }
 0x5a7   :  { %v1565_v22 = vmul.f32 0.03125, %v1519_v35 }
 0x5a9   :  { %v1581_v24 = vadd.f32 1e-05, %v1565_v22 }
 0x5aa   :  { %v1522_v25 = vpop.xlane.xlu1 %1521  ;;  %v1525_v27 = vpop.xlane.xlu0 %1524 }
 0x5ab   :  { %2821 = vrsqrt.f32 %v1581_v24  ;;  %v1566_v29 = vmul.f32 0.03125, %v1522_v25  ;;  %v1567_v31 = vmul.f32 0.03125, %v1525_v27 }
 0x5ad   :  { %v1582_v36 = vadd.f32 1e-05, %v1566_v29  ;;  %v1583_v8 = vadd.f32 1e-05, %v1567_v31 }
 0x5ae   :  { %v1528_v13 = vpop.xlane.xlu1 %1527  ;;  %v1531_v7 = vpop.xlane.xlu0 %1530 }
 0x5af   :  { %2823 = vrsqrt.f32 %v1582_v36  ;;  %v1568_v43 = vmul.f32 0.03125, %v1528_v13  ;;  %v1569_v47 = vmul.f32 0.03125, %v1531_v7 }
 0x5b0   :  { %2825 = vrsqrt.f32 %v1583_v8 }
 0x5b1   :  { %v1584_v17 = vadd.f32 1e-05, %v1568_v43  ;;  %v1585_v63 = vadd.f32 1e-05, %v1569_v47 }
 0x5b2   :  { %v1534_v34 = vpop.xlane.xlu1 %1533  ;;  %v1537_v4 = vpop.xlane.xlu0 %1536 }
 0x5b3   :  { %2827 = vrsqrt.f32 %v1584_v17  ;;  %v1570_v60 = vmul.f32 0.03125, %v1534_v34  ;;  %v1571_v20 = vmul.f32 0.03125, %v1537_v4 }
 0x5b4   :  { %2829 = vrsqrt.f32 %v1585_v63 }
 0x5b5   :  { %v2822_v53 = vpop.eup %2821  ;;  %v1586_v0 = vadd.f32 1e-05, %v1570_v60  ;;  %v1587_v2 = vadd.f32 1e-05, %v1571_v20 }
 0x5b6   :  { %v1613_v6 = vmul.f32 %v2822_v53, %v3555_v21  ;;  %v1540_v18 = vpop.xlane.xlu1 %1539  ;;  %v1543_v28 = vpop.xlane.xlu0 %1542 }
 0x5b7   :  { %2831 = vrsqrt.f32 %v1586_v0  ;;  %v1572_v10 = vmul.f32 0.03125, %v1540_v18  ;;  %v1573_v38 = vmul.f32 0.03125, %v1543_v28 }
 0x5b8   :  { %2833 = vrsqrt.f32 %v1587_v2  ;;  %v1633_v14 = vmul.f32 %v3659_v58, %v1613_v6 }
 0x5b9   :  { %v2824_v41 = vpop.eup %2823  ;;  %v1588_v46 = vadd.f32 1e-05, %v1572_v10  ;;  %v1589_v40 = vadd.f32 1e-05, %v1573_v38 }
 0x5ba   :  { %v2826_v48 = vpop.eup %2825  ;;  %v1614_v9 = vmul.f32 %v2824_v41, %v3563_v32  ;;  %v1546_v21 = vpop.xlane.xlu1 %1545  ;;  %v3672_v29 = vadd.f32 %v3664_v52, %v1633_v14 }
 0x5bb   :  { %v1549_v49 = vpop.xlane.xlu0 %1548  ;;  %v1615_v51 = vmul.f32 %v2826_v48, %v3552_v19  ;;  %2835 = vrsqrt.f32 %v1588_v46  ;;  %v1574_v62 = vmul.f32 0.03125, %v1546_v21 }
 0x5bc   :  { %v1575_v57 = vmul.f32 0.03125, %v1549_v49  ;;  %2837 = vrsqrt.f32 %v1589_v40  ;;  %v1634_v56 = vmul.f32 %v3659_v58, %v1614_v9 }
 0x5bd   :  { %v2828_v59 = vpop.eup %2827  ;;  %v1635_v33 = vmul.f32 %v3659_v58, %v1615_v51  ;;  %v1590_v35 = vadd.f32 1e-05, %v1574_v62 }
 0x5be   :  { %v1591_v32 = vadd.f32 1e-05, %v1575_v57  ;;  %v2830_v22 = vpop.eup %2829  ;;  %v1616_v24 = vmul.f32 %v2828_v59, %v3560_v30  ;;  %v1552_v25 = vpop.xlane.xlu1 %1551  ;;  %v3675_v19 = vadd.f32 %v3664_v52, %v1634_v56 }
 0x5bf   :  { %v1555_v27 = vpop.xlane.xlu0 %1554  ;;  %v1617_v31 = vmul.f32 %v2830_v22, %v3573_v45  ;;  %2839 = vrsqrt.f32 %v1590_v35  ;;  %v1576_v36 = vmul.f32 0.03125, %v1552_v25  ;;  %v3682_v43 = vadd.f32 %v3664_v52, %v1635_v33 }
 0x5c0   :  { %v1636_v8 = vmul.f32 %v3659_v58, %v1616_v24  ;;  %2841 = vrsqrt.f32 %v1591_v32  ;;  %v1577_v13 = vmul.f32 0.03125, %v1555_v27  ;;  %v1669_v7 = vpack.c.bf16 %v3675_v19, %v3672_v29 }
 0x5c1   :  { %v2832_v30 = vpop.eup %2831  ;;  %v1592_v47 = vadd.f32 1e-05, %v1576_v36  ;;  %v1637_v60 = vmul.f32 %v3659_v58, %v1617_v31 }
 0x5c2   :  { %v2834_v17 = vpop.eup %2833  ;;  %v3685_v63 = vadd.f32 %v3664_v52, %v1636_v8  ;;  %v1618_v45 = vmul.f32 %v2832_v30, %v3578_v55  ;;  %v1593_v61 = vadd.f32 1e-05, %v1577_v13  ;;  %v1558_v34 = vpop.xlane.xlu1 %1557  ;;  %2663 = vmatprep.mubr.msk.bf16.mxu1 %vm112_vm0, %v1669_v7 }
 0x5c3   :  { %v1561_v4 = vpop.xlane.xlu0 %1560  ;;  %v1619_v20 = vmul.f32 %v2834_v17, %v3584_v3  ;;  %2843 = vrsqrt.f32 %v1592_v47  ;;  %v1578_v53 = vmul.f32 0.03125, %v1558_v34  ;;  %v3697_v3 = vadd.f32 %v3664_v52, %v1637_v60 }
 0x5c4   :  { %v1579_v0 = vmul.f32 0.03125, %v1561_v4  ;;  %2845 = vrsqrt.f32 %v1593_v61  ;;  %v1670_v2 = vpack.c.bf16 %v3685_v63, %v3682_v43  ;;  %v1638_v6 = vmul.f32 %v3659_v58, %v1618_v45 }
 0x5c5   :  { %v2836_v16 = vpop.eup %2835  ;;  %v1594_v55 = vadd.f32 1e-05, %v1578_v53  ;;  %v1639_v46 = vmul.f32 %v3659_v58, %v1619_v20 }
 0x5c6   :  { %v1595_v18 = vadd.f32 1e-05, %v1579_v0  ;;  %v2838_v28 = vpop.eup %2837  ;;  %v1620_v10 = vmul.f32 %v2836_v16, %v3590_v23  ;;  %v1564_v38 = vpop.xlane.xlu1 %1563  ;;  %2664 = vmatmul.mubr.msk.bf16.vlgmr.msra.gmra.mrb[48].mxu1 %vm112_vm0, %v1670_v2  ;;  %v3700_v41 = vadd.f32 %v3664_v52, %v1638_v6  ;;  %v1680_v0 = vrot.slane %v3413_v15, %v268_v11 }
 0x5c7   :  { %v1621_v40 = vmul.f32 %v2838_v28, %v3596_v37  ;;  %2847 = vrsqrt.f32 %v1594_v55  ;;  %v1580_v48 = vmul.f32 0.03125, %v1564_v38  ;;  %v3710_v62 = vadd.f32 %v3664_v52, %v1639_v46 }
 0x5c8   :  { %2849 = vrsqrt.f32 %v1595_v18  ;;  %v1671_v9 = vpack.c.bf16 %v3700_v41, %v3697_v3  ;;  %v1640_v23 = vmul.f32 %v3659_v58, %v1620_v10 }
 0x5c9   :  { %v2840_v21 = vpop.eup %2839  ;;  %v1596_v49 = vadd.f32 1e-05, %v1580_v48  ;;  %v1641_v57 = vmul.f32 %v3659_v58, %v1621_v40 }
 0x5ca   :  { %v2842_v14 = vpop.eup %2841  ;;  %v1622_v51 = vmul.f32 %v2840_v21, %v3602_v26  ;;  %2667 = vmatprep.mubr.msk.bf16.mxu1 %vm112_vm0, %v1671_v9  ;;  %v3713_v37 = vadd.f32 %v3664_v52, %v1640_v23 }
 0x5cb   :  { %v1623_v56 = vmul.f32 %v2842_v14, %v3608_v54  ;;  %2851 = vrsqrt.f32 %v1596_v49  ;;  %v3723_v22 = vadd.f32 %v3664_v52, %v1641_v57 }
 0x5cc   :  { %v1672_v59 = vpack.c.bf16 %v3713_v37, %v3710_v62  ;;  %v1642_v33 = vmul.f32 %v3659_v58, %v1622_v51 }
 0x5cd   :  { %v2844_v35 = vpop.eup %2843  ;;  %v1643_v54 = vmul.f32 %v3659_v58, %v1623_v56 }
 0x5ce   :  { %v2846_v26 = vpop.eup %2845  ;;  %v1624_v32 = vmul.f32 %v2844_v35, %v3614_v1  ;;  %2668 = vmatmul.mubr.msk.bf16.gmra.mrb[52].mxu1 %vm112_vm0, %v1672_v59  ;;  %v3726_v24 = vadd.f32 %v3664_v52, %v1642_v33 }
 0x5cf   :  { %v1625_v25 = vmul.f32 %v2846_v26, %v3620_v12  ;;  %v3736_v13 = vadd.f32 %v3664_v52, %v1643_v54 }
 0x5d0   :  { %v1673_v27 = vpack.c.bf16 %v3726_v24, %v3723_v22  ;;  %v1644_v31 = vmul.f32 %v3659_v58, %v1624_v32 }
 0x5d1   :  { %v2848_v36 = vpop.eup %2847  ;;  %v1645_v30 = vmul.f32 %v3659_v58, %v1625_v25 }
 0x5d2   :  { %v2850_v8 = vpop.eup %2849  ;;  %v1626_v1 = vmul.f32 %v2848_v36, %v3626_v42  ;;  %2671 = vmatprep.mubr.msk.bf16.mxu1 %vm112_vm0, %v1673_v27  ;;  %v3739_v7 = vadd.f32 %v3664_v52, %v1644_v31 }
 0x5d3   :  { %v1627_v12 = vmul.f32 %v2850_v8, %v3632_v44  ;;  %v3749_v61 = vadd.f32 %v3664_v52, %v1645_v30 }
 0x5d4   :  { %v1674_v47 = vpack.c.bf16 %v3739_v7, %v3736_v13  ;;  %v1646_v17 = vmul.f32 %v3659_v58, %v1626_v1 }
 0x5d5   :  { %v2852_v45 = vpop.eup %2851  ;;  %v1647_v4 = vmul.f32 %v3659_v58, %v1627_v12 }
 0x5d6   :  { %v1628_v42 = vmul.f32 %v2852_v45, %v3638_v50  ;;  %2672 = vmatmul.mubr.msk.bf16.gmra.mrb[56].mxu1 %vm112_vm0, %v1674_v47  ;;  %v3752_v34 = vadd.f32 %v3664_v52, %v1646_v17 }
 0x5d7   :  { %v3760_v20 = vadd.f32 %v3664_v52, %v1647_v4 }
 0x5d8   :  { %v1675_v44 = vpack.c.bf16 %v3752_v34, %v3749_v61  ;;  %v1648_v60 = vmul.f32 %v3659_v58, %v1628_v42 }
 0x5da   :  { %2675 = vmatprep.mubr.msk.bf16.mxu1 %vm112_vm0, %v1675_v44  ;;  %v3763_v50 = vadd.f32 %v3664_v52, %v1648_v60 }
 0x5dc   :  { %v1676_v53 = vpack.c.bf16 %v3763_v50, %v3760_v20 }
 0x5de   :  { %2676 = vmatmul.mubr.msk.bf16.gmra.mrb[60].mxu1 %vm112_vm0, %v1676_v53 }
 0x699   :  { %v2665_v2 = vpop.f32.mrb[48].mxu1 }
 0x69a   :  { %v1760_v6 = vadd.f32 %v2665_v2, %v1680_v0  ;;  %v1751_v58 = vpop.f32.mrb[49].mxu1 }
 0x69b   :  { %v1752_v16 = vadd.f32 %v1751_v58, %v1680_v0  ;;  %v2666_v55 = vpop.f32.mrb[50].mxu1 }
 0x69c   :  { %v1763_v18 = vadd.f32 %v2666_v55, %v1680_v0  ;;  %v1754_v28 = vpop.f32.mrb[51].mxu1  ;;  %v1816_v38 = vmax.f32 %v1760_v6, 0.0 }
 0x69d   :  { %v1755_v10 = vadd.f32 %v1754_v28, %v1680_v0  ;;  %v1814_v46 = vmax.f32 %v1752_v16, 0.0 }
 0x69e   :  { %v1817_v52 = vmax.f32 %v1763_v18, 0.0 }
 0x69f   :  { %v1815_v40 = vmax.f32 %v1755_v10, 0.0 }
 0x6a0   :  { %v1831_v48 = vpack.c.bf16 %v1817_v52, %v1816_v38 }
 0x6a1   :  { %v1830_v9 = vpack.c.bf16 %v1815_v40, %v1814_v46  ;;  %v2669_v23 = vpop.f32.mrb[52].mxu1 }
 0x6a2   :  { %v1776_v21 = vadd.f32 %v2669_v23, %v1680_v0  ;;  %v1767_v49 = vpop.f32.mrb[53].mxu1 }
 0x6a3   :  { %v1768_v14 = vadd.f32 %v1767_v49, %v1680_v0  ;;  %v2670_v51 = vpop.f32.mrb[54].mxu1  ;;  %2683 = vmatprep.mubr.msk.bf16.mxu0 %vm112_vm0, %v1830_v9 }
 0x6a4   :  { %v1779_v11 = vadd.f32 %v2670_v51, %v1680_v0  ;;  %v1770_v57 = vpop.f32.mrb[55].mxu1  ;;  %2684 = vmatmul.mubr.msk.bf16.vlgmr.msra.gmra.mrb[64].mxu0 %vm112_vm0, %v1831_v48  ;;  %v1820_v59 = vmax.f32 %v1776_v21, 0.0  ;;  %v3782_v48 = vrot.slane %v3413_v15, %v497_v39 }
 0x6a5   :  { %v1771_v56 = vadd.f32 %v1770_v57, %v1680_v0  ;;  %v1818_v35 = vmax.f32 %v1768_v14, 0.0 }
 0x6a6   :  { %v1821_v33 = vmax.f32 %v1779_v11, 0.0 }
 0x6a7   :  { %v1819_v26 = vmax.f32 %v1771_v56, 0.0 }
 0x6a8   :  { %v1833_v32 = vpack.c.bf16 %v1821_v33, %v1820_v59 }
 0x6a9   :  { %v1832_v54 = vpack.c.bf16 %v1819_v26, %v1818_v35  ;;  %v2673_v25 = vpop.f32.mrb[56].mxu1 }
 0x6aa   :  { %v1792_v27 = vadd.f32 %v2673_v25, %v1680_v0  ;;  %v1783_v31 = vpop.f32.mrb[57].mxu1 }
 0x6ab   :  { %v1784_v36 = vadd.f32 %v1783_v31, %v1680_v0  ;;  %v2674_v8 = vpop.f32.mrb[58].mxu1  ;;  %2687 = vmatprep.mubr.msk.bf16.mxu0 %vm112_vm0, %v1832_v54 }
 0x6ac   :  { %v1795_v1 = vadd.f32 %v2674_v8, %v1680_v0  ;;  %v1786_v30 = vpop.f32.mrb[59].mxu1  ;;  %2688 = vmatmul.mubr.msk.bf16.gmra.mrb[68].mxu0 %vm112_vm0, %v1833_v32  ;;  %v1824_v47 = vmax.f32 %v1792_v27, 0.0 }
 0x6ad   :  { %v1787_v12 = vadd.f32 %v1786_v30, %v1680_v0  ;;  %v1822_v45 = vmax.f32 %v1784_v36, 0.0 }
 0x6ae   :  { %v1825_v17 = vmax.f32 %v1795_v1, 0.0 }
 0x6af   :  { %v1823_v42 = vmax.f32 %v1787_v12, 0.0 }
 0x6b0   :  { %v1835_v4 = vpack.c.bf16 %v1825_v17, %v1824_v47 }
 0x6b1   :  { %v1834_v44 = vpack.c.bf16 %v1823_v42, %v1822_v45  ;;  %v2677_v60 = vpop.f32.mrb[60].mxu1 }
 0x6b2   :  { %v1808_v53 = vadd.f32 %v2677_v60, %v1680_v0  ;;  %v1799_v2 = vpop.f32.mrb[61].mxu1 }
 0x6b3   :  { %v1800_v6 = vadd.f32 %v1799_v2, %v1680_v0  ;;  %v2678_v58 = vpop.f32.mrb[62].mxu1  ;;  %2691 = vmatprep.mubr.msk.bf16.mxu0 %vm112_vm0, %v1834_v44 }
 0x6b4   :  { %v1811_v16 = vadd.f32 %v2678_v58, %v1680_v0  ;;  %v1802_v55 = vpop.f32.mrb[63].mxu1  ;;  %2692 = vmatmul.mubr.msk.bf16.gmra.mrb[72].mxu0 %vm112_vm0, %v1835_v4  ;;  %v1828_v28 = vmax.f32 %v1808_v53, 0.0 }
 0x6b5   :  { %v1803_v18 = vadd.f32 %v1802_v55, %v1680_v0  ;;  %v1826_v38 = vmax.f32 %v1800_v6, 0.0 }
 0x6b6   :  { %v1829_v10 = vmax.f32 %v1811_v16, 0.0 }
 0x6b7   :  { %v1827_v52 = vmax.f32 %v1803_v18, 0.0 }
 0x6b8   :  { %v1837_v46 = vpack.c.bf16 %v1829_v10, %v1828_v28 }
 0x6b9   :  { %v1836_v40 = vpack.c.bf16 %v1827_v52, %v1826_v38 }
 0x6bb   :  { %2695 = vmatprep.mubr.msk.bf16.mxu0 %vm112_vm0, %v1836_v40 }
 0x6bc   :  { %2696 = vmatmul.mubr.msk.bf16.gmra.mrb[76].mxu0 %vm112_vm0, %v1837_v46 }
 0x777   :  { %v2685_v9 = vpop.f32.mrb[64].mxu0 }
 0x778   :  { %v1921_v23 = vadd.f32 %v2685_v9, %v3782_v48  ;;  %v1912_v21 = vpop.f32.mrb[65].mxu0 }
 0x779   :  { %v1913_v0 = vadd.f32 %v1912_v21, %v3782_v48  ;;  %v2686_v49 = vpop.f32.mrb[66].mxu0 }
 0x77a   :  { %v1924_v14 = vadd.f32 %v2686_v49, %v3782_v48  ;;  %v1915_v51 = vpop.f32.mrb[67].mxu0  ;;  %v3788_v11 = vadd.f32 %v1921_v23, %v3682_v43 }
 0x77b   :  { %v1916_v57 = vadd.f32 %v1915_v51, %v3782_v48  ;;  %v3797_v15 = vadd.f32 %v1913_v0, %v3672_v29 }
 0x77c   :  { %v1997_v56 = vsel %vm112_vm0, %v3788_v11, 0.0  ;;  %v3794_v39 = vadd.f32 %v1924_v14, %v3685_v63 }
 0x77d   :  { %1998 = vadd.xlane.f32.xlu0 %v1997_v56  ;;  %v3802_v33 = vadd.f32 %v1916_v57, %v3675_v19  ;;  %v1991_v32 = vsel %vm112_vm0, %v3797_v15, 0.0 }
 0x77e   :  { %v2000_v59 = vsel %vm112_vm0, %v3794_v39, 0.0 }
 0x77f   :  { %2001 = vadd.xlane.f32.xlu1 %v2000_v59  ;;  %v2689_v43 = vpop.f32.mrb[68].mxu0  ;;  %v1994_v27 = vsel %vm112_vm0, %v3802_v33, 0.0 }
 0x780   :  { %v1937_v35 = vadd.f32 %v2689_v43, %v3782_v48  ;;  %v1928_v26 = vpop.f32.mrb[69].mxu0 }
 0x781   :  { %v1929_v63 = vadd.f32 %v1928_v26, %v3782_v48  ;;  %1992 = vadd.xlane.f32.xlu0 %v1991_v32  ;;  %v2690_v29 = vpop.f32.mrb[70].mxu0 }
 0x782   :  { %v1940_v54 = vadd.f32 %v2690_v29, %v3782_v48  ;;  %v1931_v25 = vpop.f32.mrb[71].mxu0  ;;  %v3812_v19 = vadd.f32 %v1937_v35, %v3710_v62 }
 0x783   :  { %v1932_v31 = vadd.f32 %v1931_v25, %v3782_v48  ;;  %1995 = vadd.xlane.f32.xlu1 %v1994_v27  ;;  %v3821_v1 = vadd.f32 %v1929_v63, %v3697_v3 }
 0x784   :  { %v2009_v36 = vsel %vm112_vm0, %v3812_v19, 0.0  ;;  %v3818_v8 = vadd.f32 %v1940_v54, %v3713_v37 }
 0x785   :  { %2010 = vadd.xlane.f32.xlu0 %v2009_v36  ;;  %v3826_v12 = vadd.f32 %v1932_v31, %v3700_v41  ;;  %v2003_v45 = vsel %vm112_vm0, %v3821_v1, 0.0 }
 0x786   :  { %v2012_v30 = vsel %vm112_vm0, %v3818_v8, 0.0 }
 0x787   :  { %2013 = vadd.xlane.f32.xlu1 %v2012_v30  ;;  %v2693_v62 = vpop.f32.mrb[72].mxu0  ;;  %v2006_v44 = vsel %vm112_vm0, %v3826_v12, 0.0 }
 0x788   :  { %v1953_v47 = vadd.f32 %v2693_v62, %v3782_v48  ;;  %v1944_v17 = vpop.f32.mrb[73].mxu0 }
 0x789   :  { %v1945_v37 = vadd.f32 %v1944_v17, %v3782_v48  ;;  %2004 = vadd.xlane.f32.xlu0 %v2003_v45  ;;  %v2694_v3 = vpop.f32.mrb[74].mxu0 }
 0x78a   :  { %v1956_v42 = vadd.f32 %v2694_v3, %v3782_v48  ;;  %v1947_v4 = vpop.f32.mrb[75].mxu0  ;;  %v3836_v41 = vadd.f32 %v1953_v47, %v3736_v13 }
 0x78b   :  { %v1948_v60 = vadd.f32 %v1947_v4, %v3782_v48  ;;  %2007 = vadd.xlane.f32.xlu1 %v2006_v44  ;;  %v3845_v6 = vadd.f32 %v1945_v37, %v3723_v22 }
 0x78c   :  { %v2021_v53 = vsel %vm112_vm0, %v3836_v41, 0.0  ;;  %v3842_v2 = vadd.f32 %v1956_v42, %v3739_v7 }
 0x78d   :  { %2022 = vadd.xlane.f32.xlu0 %v2021_v53  ;;  %v3850_v16 = vadd.f32 %v1948_v60, %v3726_v24  ;;  %v2015_v18 = vsel %vm112_vm0, %v3845_v6, 0.0 }
 0x78e   :  { %v2024_v58 = vsel %vm112_vm0, %v3842_v2, 0.0 }
 0x78f   :  { %2025 = vadd.xlane.f32.xlu1 %v2024_v58  ;;  %v2697_v13 = vpop.f32.mrb[76].mxu0  ;;  %v2018_v38 = vsel %vm112_vm0, %v3850_v16, 0.0 }
 0x790   :  { %v1960_v55 = vpop.f32.mrb[77].mxu0  ;;  %v1969_v28 = vadd.f32 %v2697_v13, %v3782_v48 }
 0x791   :  { %v1961_v7 = vadd.f32 %v1960_v55, %v3782_v48  ;;  %2016 = vadd.xlane.f32.xlu0 %v2015_v18  ;;  %v2698_v22 = vpop.f32.mrb[78].mxu0 }
 0x792   :  { %v1963_v10 = vpop.f32.mrb[79].mxu0  ;;  %v1972_v52 = vadd.f32 %v2698_v22, %v3782_v48  ;;  %v3869_v23 = vadd.f32 %v1969_v28, %v3760_v20 }
 0x793   :  { %v1964_v24 = vadd.f32 %v1963_v10, %v3782_v48  ;;  %2019 = vadd.xlane.f32.xlu1 %v2018_v38  ;;  %v3861_v46 = vadd.f32 %v1961_v7, %v3749_v61 }
 0x794   :  { %v3874_v0 = vadd.f32 %v1972_v52, %v3763_v50  ;;  %v2033_v61 = vsel %vm112_vm0, %v3869_v23, 0.0 }
 0x795   :  { %v2027_v40 = vsel %vm112_vm0, %v3861_v46, 0.0  ;;  %v3866_v9 = vadd.f32 %v1964_v24, %v3752_v34 }
 0x796   :  { %2028 = vadd.xlane.f32.xlu0 %v2027_v40  ;;  %v2036_v48 = vsel %vm112_vm0, %v3874_v0, 0.0 }
 0x797   :  { %v2030_v21 = vsel %vm112_vm0, %v3866_v9, 0.0 }
 0x798   :  { %2031 = vadd.xlane.f32.xlu1 %v2030_v21 }
 0x79a   :  { %2034 = vadd.xlane.f32.xlu0 %v2033_v61 }
 0x79c   :  { %2037 = vadd.xlane.f32.xlu1 %v2036_v48 }
 0x80a   :  { %v1999_v34 = vpop.xlane.xlu0 %1998 }
 0x80b   :  { %v2041_v49 = vmul.f32 0.03125, %v1999_v34 }
 0x80c   :  { %v2002_v20 = vpop.xlane.xlu1 %2001 }
 0x80d   :  { %v3881_v14 = vsub.f32 %v3788_v11, %v2041_v49  ;;  %v2042_v51 = vmul.f32 0.03125, %v2002_v20 }
 0x80e   :  { %v1993_v57 = vpop.xlane.xlu0 %1992 }
 0x80f   :  { %v3884_v50 = vsub.f32 %v3794_v39, %v2042_v51  ;;  %v2039_v56 = vmul.f32 0.03125, %v1993_v57  ;;  %v2073_v59 = vmul.f32 %v3881_v14, %v3881_v14 }
 0x810   :  { %v1996_v43 = vpop.xlane.xlu1 %1995 }
 0x811   :  { %v3889_v35 = vsub.f32 %v3797_v15, %v2039_v56  ;;  %v2040_v26 = vmul.f32 0.03125, %v1996_v43  ;;  %v2093_v32 = vsel %vm112_vm0, %v2073_v59, 0.0  ;;  %v2074_v11 = vmul.f32 %v3884_v50, %v3884_v50 }
 0x812   :  { %2094 = vadd.xlane.f32.xlu0 %v2093_v32  ;;  %v2011_v63 = vpop.xlane.xlu0 %2010 }
 0x813   :  { %v3895_v29 = vsub.f32 %v3802_v33, %v2040_v26  ;;  %v2045_v39 = vmul.f32 0.03125, %v2011_v63  ;;  %v2096_v54 = vsel %vm112_vm0, %v2074_v11, 0.0  ;;  %v2071_v25 = vmul.f32 %v3889_v35, %v3889_v35 }
 0x814   :  { %v2014_v27 = vpop.xlane.xlu1 %2013  ;;  %2097 = vadd.xlane.f32.xlu1 %v2096_v54 }
 0x815   :  { %v3901_v15 = vsub.f32 %v3812_v19, %v2045_v39  ;;  %v2046_v31 = vmul.f32 0.03125, %v2014_v27  ;;  %v2087_v36 = vsel %vm112_vm0, %v2071_v25, 0.0  ;;  %v2072_v30 = vmul.f32 %v3895_v29, %v3895_v29 }
 0x816   :  { %2088 = vadd.xlane.f32.xlu0 %v2087_v36  ;;  %v2005_v33 = vpop.xlane.xlu0 %2004 }
 0x817   :  { %v3907_v62 = vsub.f32 %v3818_v8, %v2046_v31  ;;  %v2043_v47 = vmul.f32 0.03125, %v2005_v33  ;;  %v2090_v17 = vsel %vm112_vm0, %v2072_v30, 0.0  ;;  %v2077_v45 = vmul.f32 %v3901_v15, %v3901_v15 }
 0x818   :  { %v2008_v37 = vpop.xlane.xlu1 %2007  ;;  %2091 = vadd.xlane.f32.xlu1 %v2090_v17 }
 0x819   :  { %v3913_v19 = vsub.f32 %v3821_v1, %v2043_v47  ;;  %v2044_v3 = vmul.f32 0.03125, %v2008_v37  ;;  %v2105_v42 = vsel %vm112_vm0, %v2077_v45, 0.0  ;;  %v2078_v4 = vmul.f32 %v3907_v62, %v3907_v62 }
 0x81a   :  { %2106 = vadd.xlane.f32.xlu0 %v2105_v42  ;;  %v2023_v8 = vpop.xlane.xlu0 %2022 }
 0x81b   :  { %v3919_v44 = vsub.f32 %v3826_v12, %v2044_v3  ;;  %v2049_v60 = vmul.f32 0.03125, %v2023_v8  ;;  %v2108_v53 = vsel %vm112_vm0, %v2078_v4, 0.0  ;;  %v2075_v58 = vmul.f32 %v3913_v19, %v3913_v19 }
 0x81c   :  { %v2026_v13 = vpop.xlane.xlu1 %2025  ;;  %2109 = vadd.xlane.f32.xlu1 %v2108_v53 }
 0x81d   :  { %v3925_v1 = vsub.f32 %v3836_v41, %v2049_v60  ;;  %v2050_v55 = vmul.f32 0.03125, %v2026_v13  ;;  %v2099_v18 = vsel %vm112_vm0, %v2075_v58, 0.0  ;;  %v2076_v28 = vmul.f32 %v3919_v44, %v3919_v44 }
 0x81e   :  { %2100 = vadd.xlane.f32.xlu0 %v2099_v18  ;;  %v2017_v12 = vpop.xlane.xlu0 %2016  ;;  %v2201_v13 = vsub.s32 5, %v3143_v5 }
 0x81f   :  { %v3931_v7 = vsub.f32 %v3842_v2, %v2050_v55  ;;  %v2047_v22 = vmul.f32 0.03125, %v2017_v12  ;;  %v2102_v10 = vsel %vm112_vm0, %v2076_v28, 0.0  ;;  %v2081_v38 = vmul.f32 %v3925_v1, %v3925_v1 }
 0x820   :  { %v2020_v52 = vpop.xlane.xlu1 %2019  ;;  %2103 = vadd.xlane.f32.xlu1 %v2102_v10  ;;  %v2221_v12 = vsub.s32 6, %v3143_v5 }
 0x821   :  { %v3937_v41 = vsub.f32 %v3845_v6, %v2047_v22  ;;  %v2048_v24 = vmul.f32 0.03125, %v2020_v52  ;;  %v2117_v40 = vsel %vm112_vm0, %v2081_v38, 0.0  ;;  %v2082_v21 = vmul.f32 %v3931_v7, %v3931_v7  ;;  %v2901_v52 = vld [vmem:[%s4108_s8] sm:$0xff] }
 0x822   :  { %2118 = vadd.xlane.f32.xlu0 %v2117_v40 }
 0x823   :  { %v3943_v2 = vsub.f32 %v3850_v16, %v2048_v24  ;;  %v2029_v61 = vpop.xlane.xlu0 %2028  ;;  %v2120_v48 = vsel %vm112_vm0, %v2082_v21, 0.0  ;;  %v2079_v34 = vmul.f32 %v3937_v41, %v3937_v41  ;;  %v3981_v24 = vrot.slane %v2901_v52, %v2201_v13 }
 0x824   :  { %v2051_v49 = vmul.f32 0.03125, %v2029_v61  ;;  %2121 = vadd.xlane.f32.xlu1 %v2120_v48 }
 0x825   :  { %v2032_v6 = vpop.xlane.xlu1 %2031  ;;  %v2111_v20 = vsel %vm112_vm0, %v2079_v34, 0.0  ;;  %v2080_v51 = vmul.f32 %v3943_v2, %v3943_v2  ;;  %v3983_v34 = vrot.slane %v2901_v52, %v2221_v12 }
 0x826   :  { %v3952_v57 = vsub.f32 %v3861_v46, %v2051_v49  ;;  %v2052_v56 = vmul.f32 0.03125, %v2032_v6  ;;  %2112 = vadd.xlane.f32.xlu0 %v2111_v20 }
 0x827   :  { %v2035_v16 = vpop.xlane.xlu0 %2034  ;;  %v2114_v59 = vsel %vm112_vm0, %v2080_v51, 0.0 }
 0x828   :  { %v3956_v43 = vsub.f32 %v3866_v9, %v2052_v56  ;;  %v2053_v26 = vmul.f32 0.03125, %v2035_v16  ;;  %2115 = vadd.xlane.f32.xlu1 %v2114_v59  ;;  %v2083_v32 = vmul.f32 %v3952_v57, %v3952_v57 }
 0x829   :  { %v2038_v11 = vpop.xlane.xlu1 %2037 }
 0x82a   :  { %v3961_v63 = vsub.f32 %v3869_v23, %v2053_v26  ;;  %v2054_v39 = vmul.f32 0.03125, %v2038_v11  ;;  %v2123_v46 = vsel %vm112_vm0, %v2083_v32, 0.0  ;;  %v2084_v54 = vmul.f32 %v3956_v43, %v3956_v43 }
 0x82b   :  { %2124 = vadd.xlane.f32.xlu0 %v2123_v46 }
 0x82c   :  { %v3967_v25 = vsub.f32 %v3874_v0, %v2054_v39  ;;  %v2126_v9 = vsel %vm112_vm0, %v2084_v54, 0.0  ;;  %v2085_v27 = vmul.f32 %v3961_v63, %v3961_v63 }
 0x82d   :  { %2127 = vadd.xlane.f32.xlu1 %v2126_v9 }
 0x82e   :  { %v2129_v31 = vsel %vm112_vm0, %v2085_v27, 0.0  ;;  %v2086_v23 = vmul.f32 %v3967_v25, %v3967_v25 }
 0x82f   :  { %2130 = vadd.xlane.f32.xlu0 %v2129_v31 }
 0x830   :  { %v2132_v36 = vsel %vm112_vm0, %v2086_v23, 0.0 }
 0x831   :  { %2133 = vadd.xlane.f32.xlu1 %v2132_v36 }
 0x89f   :  { %v2095_v30 = vpop.xlane.xlu0 %2094 }
 0x8a0   :  { %v2137_v33 = vmul.f32 0.03125, %v2095_v30 }
 0x8a1   :  { %v2098_v47 = vpop.xlane.xlu1 %2097 }
 0x8a2   :  { %v2153_v0 = vadd.f32 1e-05, %v2137_v33  ;;  %v2138_v17 = vmul.f32 0.03125, %v2098_v47 }
 0x8a3   :  { %v2089_v45 = vpop.xlane.xlu0 %2088 }
 0x8a4   :  { %2853 = vrsqrt.f32 %v2153_v0  ;;  %v2154_v37 = vadd.f32 1e-05, %v2138_v17  ;;  %v2135_v3 = vmul.f32 0.03125, %v2089_v45 }
 0x8a5   :  { %v2092_v42 = vpop.xlane.xlu1 %2091 }
 0x8a6   :  { %2855 = vrsqrt.f32 %v2154_v37  ;;  %v2151_v4 = vadd.f32 1e-05, %v2135_v3  ;;  %v2136_v8 = vmul.f32 0.03125, %v2092_v42 }
 0x8a7   :  { %v2107_v60 = vpop.xlane.xlu0 %2106 }
 0x8a8   :  { %2857 = vrsqrt.f32 %v2151_v4  ;;  %v2152_v53 = vadd.f32 1e-05, %v2136_v8  ;;  %v2141_v58 = vmul.f32 0.03125, %v2107_v60 }
 0x8a9   :  { %v2110_v55 = vpop.xlane.xlu1 %2109 }
 0x8aa   :  { %2859 = vrsqrt.f32 %v2152_v53  ;;  %v2157_v18 = vadd.f32 1e-05, %v2141_v58  ;;  %v2142_v28 = vmul.f32 0.03125, %v2110_v55 }
 0x8ab   :  { %v2101_v22 = vpop.xlane.xlu0 %2100 }
 0x8ac   :  { %2861 = vrsqrt.f32 %v2157_v18  ;;  %v2158_v10 = vadd.f32 1e-05, %v2142_v28  ;;  %v2139_v38 = vmul.f32 0.03125, %v2101_v22 }
 0x8ad   :  { %v2104_v40 = vpop.xlane.xlu1 %2103 }
 0x8ae   :  { %v2854_v21 = vpop.eup %2853  ;;  %2863 = vrsqrt.f32 %v2158_v10  ;;  %v2155_v61 = vadd.f32 1e-05, %v2139_v38  ;;  %v2140_v48 = vmul.f32 0.03125, %v2104_v40 }
 0x8af   :  { %v2185_v49 = vmul.f32 %v2854_v21, %v3881_v14  ;;  %v2119_v5 = vpop.xlane.xlu0 %2118 }
 0x8b0   :  { %v2856_v6 = vpop.eup %2855  ;;  %2865 = vrsqrt.f32 %v2155_v61  ;;  %v2156_v20 = vadd.f32 1e-05, %v2140_v48  ;;  %v2145_v51 = vmul.f32 0.03125, %v2119_v5 }
 0x8b1   :  { %v2205_v56 = vmul.f32 %v3981_v24, %v2185_v49  ;;  %v2186_v16 = vmul.f32 %v2856_v6, %v3884_v50  ;;  %v2122_v59 = vpop.xlane.xlu1 %2121 }
 0x8b2   :  { %v2858_v26 = vpop.eup %2857  ;;  %2867 = vrsqrt.f32 %v2156_v20  ;;  %v2161_v32 = vadd.f32 1e-05, %v2145_v51  ;;  %v2146_v11 = vmul.f32 0.03125, %v2122_v59 }
 0x8b3   :  { %v2225_v39 = vadd.f32 %v3983_v34, %v2205_v56  ;;  %v2206_v46 = vmul.f32 %v3981_v24, %v2186_v16  ;;  %v2183_v14 = vmul.f32 %v2858_v26, %v3889_v35  ;;  %v2113_v54 = vpop.xlane.xlu0 %2112 }
 0x8b4   :  { %v2860_v9 = vpop.eup %2859  ;;  %2869 = vrsqrt.f32 %v2161_v32  ;;  %v2162_v27 = vadd.f32 1e-05, %v2146_v11  ;;  %v2143_v31 = vmul.f32 0.03125, %v2113_v54 }
 0x8b5   :  { %2241 = vst.msk [vmem:[%s4109_s12 + $0x10] sm:$0xff] %vm112_vm0, %v2225_v39  ;;  %v2226_v50 = vadd.f32 %v3983_v34, %v2206_v46  ;;  %v2203_v23 = vmul.f32 %v3981_v24, %v2183_v14  ;;  %v2184_v36 = vmul.f32 %v2860_v9, %v3895_v29  ;;  %v2116_v30 = vpop.xlane.xlu1 %2115 }
 0x8b6   :  { %v2862_v33 = vpop.eup %2861  ;;  %2871 = vrsqrt.f32 %v2162_v27  ;;  %v2159_v35 = vadd.f32 1e-05, %v2143_v31  ;;  %v2144_v47 = vmul.f32 0.03125, %v2116_v30 }
 0x8b7   :  { %2242 = vst.msk [vmem:[%s4109_s12 + $0x18] sm:$0xff] %vm112_vm0, %v2226_v50  ;;  %v2223_v0 = vadd.f32 %v3983_v34, %v2203_v23  ;;  %v2204_v17 = vmul.f32 %v3981_v24, %v2184_v36  ;;  %v2189_v45 = vmul.f32 %v2862_v33, %v3901_v15 }
 0x8b8   :  { %v2864_v37 = vpop.eup %2863  ;;  %2873 = vrsqrt.f32 %v2159_v35  ;;  %v2160_v3 = vadd.f32 1e-05, %v2144_v47  ;;  %v2125_v29 = vpop.xlane.xlu0 %2124 }
 0x8b9   :  { %2239 = vst.msk [vmem:[%s4109_s12] sm:$0xff] %vm112_vm0, %v2223_v0  ;;  %v2224_v42 = vadd.f32 %v3983_v34, %v2204_v17  ;;  %v2209_v4 = vmul.f32 %v3981_v24, %v2189_v45  ;;  %v2190_v8 = vmul.f32 %v2864_v37, %v3907_v62  ;;  %v2147_v60 = vmul.f32 0.03125, %v2125_v29 }
 0x8ba   :  { %v2866_v53 = vpop.eup %2865  ;;  %2875 = vrsqrt.f32 %v2160_v3  ;;  %v2128_v58 = vpop.xlane.xlu1 %2127 }
 0x8bb   :  { %2240 = vst.msk [vmem:[%s4109_s12 + $0x8] sm:$0xff] %vm112_vm0, %v2224_v42  ;;  %v2229_v15 = vadd.f32 %v3983_v34, %v2209_v4  ;;  %v2210_v13 = vmul.f32 %v3981_v24, %v2190_v8  ;;  %v2187_v55 = vmul.f32 %v2866_v53, %v3913_v19  ;;  %v2163_v18 = vadd.f32 1e-05, %v2147_v60 }
 0x8bc   :  { %v2868_v28 = vpop.eup %2867  ;;  %v2148_v12 = vmul.f32 0.03125, %v2128_v58  ;;  %v2131_v22 = vpop.xlane.xlu0 %2130 }
 0x8bd   :  { %2245 = vst.msk [vmem:[%s4109_s12 + $0x30] sm:$0xff] %vm112_vm0, %v2229_v15  ;;  %v2230_v62 = vadd.f32 %v3983_v34, %v2210_v13  ;;  %v2207_v10 = vmul.f32 %v3981_v24, %v2187_v55  ;;  %v2188_v38 = vmul.f32 %v2868_v28, %v3919_v44  ;;  %2877 = vrsqrt.f32 %v2163_v18 }
 0x8be   :  { %v2870_v52 = vpop.eup %2869  ;;  %v2164_v40 = vadd.f32 1e-05, %v2148_v12  ;;  %v2149_v21 = vmul.f32 0.03125, %v2131_v22  ;;  %v2134_v19 = vpop.xlane.xlu1 %2133 }
 0x8bf   :  { %2246 = vst.msk [vmem:[%s4109_s12 + $0x38] sm:$0xff] %vm112_vm0, %v2230_v62  ;;  %v2227_v61 = vadd.f32 %v3983_v34, %v2207_v10  ;;  %v2208_v48 = vmul.f32 %v3981_v24, %v2188_v38  ;;  %v2193_v49 = vmul.f32 %v2870_v52, %v3925_v1  ;;  %v2150_v5 = vmul.f32 0.03125, %v2134_v19 }
 0x8c0   :  { %v2872_v6 = vpop.eup %2871  ;;  %2879 = vrsqrt.f32 %v2164_v40  ;;  %v2165_v44 = vadd.f32 1e-05, %v2149_v21 }
 0x8c1   :  { %2243 = vst.msk [vmem:[%s4109_s12 + $0x20] sm:$0xff] %vm112_vm0, %v2227_v61  ;;  %v2228_v20 = vadd.f32 %v3983_v34, %v2208_v48  ;;  %v2213_v51 = vmul.f32 %v3981_v24, %v2193_v49  ;;  %v2194_v56 = vmul.f32 %v2872_v6, %v3931_v7  ;;  %v2166_v16 = vadd.f32 1e-05, %v2150_v5 }
 0x8c2   :  { %v2874_v59 = vpop.eup %2873  ;;  %2881 = vrsqrt.f32 %v2165_v44 }
 0x8c3   :  { %2244 = vst.msk [vmem:[%s4109_s12 + $0x28] sm:$0xff] %vm112_vm0, %v2228_v20  ;;  %v2233_v1 = vadd.f32 %v3983_v34, %v2213_v51  ;;  %v2214_v26 = vmul.f32 %v3981_v24, %v2194_v56  ;;  %v2191_v32 = vmul.f32 %v2874_v59, %v3937_v41  ;;  %2883 = vrsqrt.f32 %v2166_v16 }
 0x8c4   :  { %v2876_v11 = vpop.eup %2875 }
 0x8c5   :  { %2249 = vst.msk [vmem:[%s4109_s12 + $0x50] sm:$0xff] %vm112_vm0, %v2233_v1  ;;  %v2234_v7 = vadd.f32 %v3983_v34, %v2214_v26  ;;  %v2211_v39 = vmul.f32 %v3981_v24, %v2191_v32  ;;  %v2192_v46 = vmul.f32 %v2876_v11, %v3943_v2 }
 0x8c7   :  { %v2878_v14 = vpop.eup %2877  ;;  %2250 = vst.msk [vmem:[%s4109_s12 + $0x58] sm:$0xff] %vm112_vm0, %v2234_v7  ;;  %v2231_v41 = vadd.f32 %v3983_v34, %v2211_v39  ;;  %v2212_v54 = vmul.f32 %v3981_v24, %v2192_v46 }
 0x8c8   :  { %v2195_v9 = vmul.f32 %v2878_v14, %v3952_v57 }
 0x8c9   :  { %2247 = vst.msk [vmem:[%s4109_s12 + $0x40] sm:$0xff] %vm112_vm0, %v2231_v41  ;;  %v2232_v27 = vadd.f32 %v3983_v34, %v2212_v54 }
 0x8ca   :  { %v2880_v2 = vpop.eup %2879  ;;  %v2215_v31 = vmul.f32 %v3981_v24, %v2195_v9 }
 0x8cb   :  { %2248 = vst.msk [vmem:[%s4109_s12 + $0x48] sm:$0xff] %vm112_vm0, %v2232_v27  ;;  %v2196_v50 = vmul.f32 %v2880_v2, %v3956_v43 }
 0x8cc   :  { %v2882_v23 = vpop.eup %2881  ;;  %v2235_v57 = vadd.f32 %v3983_v34, %v2215_v31 }
 0x8cd   :  { %v2884_v36 = vpop.eup %2883  ;;  %v2216_v30 = vmul.f32 %v3981_v24, %v2196_v50  ;;  %v2197_v33 = vmul.f32 %v2882_v23, %v3961_v63 }
 0x8ce   :  { %2251 = vst.msk [vmem:[%s4109_s12 + $0x60] sm:$0xff] %vm112_vm0, %v2235_v57  ;;  %v2198_v35 = vmul.f32 %v2884_v36, %v3967_v25 }
 0x8cf   :  { %v2236_v47 = vadd.f32 %v3983_v34, %v2216_v30  ;;  %v2217_v0 = vmul.f32 %v3981_v24, %v2197_v33 }
 0x8d0   :  { %v2218_v43 = vmul.f32 %v3981_v24, %v2198_v35 }
 0x8d1   :  { %2252 = vst.msk [vmem:[%s4109_s12 + $0x68] sm:$0xff] %vm112_vm0, %v2236_v47  ;;  %v2237_v63 = vadd.f32 %v3983_v34, %v2217_v0 }
 0x8d2   :  { %v2238_v17 = vadd.f32 %v3983_v34, %v2218_v43 }
 0x8d3   :  { %2253 = vst.msk [vmem:[%s4109_s12 + $0x70] sm:$0xff] %vm112_vm0, %v2237_v63 }
 0x8d4   :  { %2254 = vst.msk [vmem:[%s4109_s12 + $0x78] sm:$0xff] %vm112_vm0, %v2238_v17 }

</bundles_post_ra>
